<compile_context>
chip_gen: v7x
topology: tpu7x:2x2x1
jax: 0.10.0
libtpu: 0.0.40
codegen_flags: <defaults>
</compile_context>

<pallas_src>
import functools

import jax
import jax.numpy as jnp
import numpy as np
from jax.experimental import pallas as pl
from jax.experimental.pallas import tpu as pltpu

# ----------------------------- problem sizes (small) -----------------------------
BATCH = 2
VOCAB = 50
LENGTH = 8            # sequence length
INPUT_SIZE = 32       # embedding dim D
N_FILT = 100          # conv output channels (logical)

# ------------------------------- padded kernel sizes -----------------------------
C_PAD = 128           # channels padded 100 -> 128 (lane-dense)
VOCAB_PAD = 128       # vocab padded 50 -> 128 (lane-dense one-hot gather)
TAPS = (2, 3, 4)      # conv kernel heights
N_TAPS = sum(TAPS)    # 9 temporal taps total
D_AUG = INPUT_SIZE + 1  # embedding dim + constant-1 column (bias folding)


def _default_b_tile():
    """nl = b_tile * LENGTH should fill MXU rows: 128 on v5e, 256 on v6e/v7x."""
    try:
        kind = jax.devices()[0].device_kind.lower()
    except Exception:
        return 16
    if "v6" in kind or "v7" in kind:
        return 32
    return 16


# --------------------------------- Pallas kernel ---------------------------------
def cnn_kernel(ids_ref, table_ref, wcat_ref, packed_ref, out_ref):
    """Whole forward: gather -> fused conv matmul -> maxpool/relu -> linear -> sigmoid.

    ids_ref    : (b_tile*L, 1)       int32  token ids (flattened batch tile)
    table_ref  : (VOCAB_PAD, D+1)    f32    padded embedding table + constant-1 column
    wcat_ref   : (D+1, 9*C_PAD)      f32    all conv taps (+ bias row) concatenated
    packed_ref : (4, C_PAD)          f32    rows 0..2: Linear(300,1) weight remapped;
                                            row 3: [b1, 0, ...]
    out_ref    : (b_tile, 1)         f32    sigmoid(logit)
    """
    nl = ids_ref.shape[0]                 # b_tile * L
    bt = nl // LENGTH

    # ---- fused embedding gather: exact one-hot matmul on the MXU -----------------
    ids = ids_ref[...]                                                  # (nl, 1) i32
    onehot = (jax.lax.broadcasted_iota(jnp.int32, (nl, VOCAB_PAD), 1)
              == ids).astype(jnp.float32)                               # (nl, VOCAB_PAD)
    emb = jnp.dot(onehot, table_ref[...],
                  preferred_element_type=jnp.float32)                   # (nl, D+1); last col == 1

    # ---- all 9 conv taps (+ folded biases) in one MXU matmul ---------------------
    y = jnp.dot(emb, wcat_ref[...],
                preferred_element_type=jnp.float32)                     # (nl, 9*C_PAD)
    y3 = y.reshape(bt, LENGTH, N_TAPS * C_PAD)                          # per-batch view

    # ---- per conv: shifted-add taps, time-max, relu, fold into Linear ------------
    feat = jnp.zeros((bt, C_PAD), jnp.float32)                          # lane-dense
    tap = 0
    for j, k in enumerate(TAPS):
        lk = LENGTH - k + 1
        acc = y3[:, 0:lk, tap * C_PAD:(tap + 1) * C_PAD]                # (bt, lk, C_PAD)
        for dt in range(1, k):
            off = (tap + dt) * C_PAD
            acc = acc + y3[:, dt:dt + lk, off:off + C_PAD]
        tap += k
        # bias already rides in acc (constant-1 column x bias row of wcat).
        # relu(maxpool(relu(x))) == relu(max_t(x)) since relu is monotone & idempotent.
        pooled = jnp.maximum(jnp.max(acc, axis=1), 0.0)                 # (bt, C_PAD)
        feat = feat + pooled * packed_ref[j:j + 1, :]                   # Linear row j

    # Dropout(p=0.5) is identity at inference time.
    # TODO(synk): training-mode dropout (stateful PRNG mask) not implemented.

    feat = feat + packed_ref[3:4, :]                                    # + b1 (lane 0, exact)
    logit = jnp.sum(feat, axis=-1, keepdims=True)                       # (bt, 1)
    out_ref[...] = jax.nn.sigmoid(logit)


# --------------------------- one-time parameter preparation -----------------------
def prepare_params(params):
    """Re-layout / pad PyTorch-shaped weights ONCE (hoisted out of the per-call path)."""
    def conv_w(w):  # (100, 1, K, D) -> (K, D, C_PAD), zero-padded channels
        w = jnp.transpose(w[:, 0, :, :].astype(jnp.float32), (1, 2, 0))  # (K, D, 100)
        return jnp.pad(w, ((0, 0), (0, 0), (0, C_PAD - N_FILT)))

    w_taps = jnp.concatenate([conv_w(params["conv3_w"]),
                              conv_w(params["conv4_w"]),
                              conv_w(params["conv5_w"])], axis=0)        # (9, D, C_PAD)
    w_cat = jnp.transpose(w_taps, (1, 0, 2)).reshape(INPUT_SIZE, N_TAPS * C_PAD)

    # Conv biases folded into the matmul: one extra weight row, multiplied by the
    # constant-1 embedding column; nonzero only in each conv's FIRST-tap columns so
    # the bias lands exactly once per output position after the shifted-tap sums.
    bias_row = jnp.zeros((1, N_TAPS * C_PAD), jnp.float32)
    first_taps = (0, 2, 5)                                               # conv3/4/5 first taps
    for j, t in enumerate(first_taps):
        b = params[f"conv{j + 3}_b"].astype(jnp.float32)                 # (100,)
        bias_row = bias_row.at[0, t * C_PAD:t * C_PAD + N_FILT].set(b)
    w_cat = jnp.concatenate([w_cat, bias_row], axis=0)                   # (D+1, 9*C_PAD)

    # Embedding table: constant-1 last column + vocab padding.
    table = params["emb"].astype(jnp.float32)                            # (VOCAB, D)
    table = jnp.concatenate([table, jnp.ones((VOCAB, 1), jnp.float32)], axis=1)
    table = jnp.pad(table, ((0, VOCAB_PAD - VOCAB), (0, 0)))             # (VOCAB_PAD, D+1)

    # Linear(300,1): entry c*3+j multiplies pooled_j[channel c] (torch cat/view order).
    w1 = params["lin1_w"].reshape(N_FILT, 3).T.astype(jnp.float32)       # (3, 100)
    w1 = jnp.pad(w1, ((0, 0), (0, C_PAD - N_FILT)))                      # (3, C_PAD)
    b1_row = jnp.zeros((1, C_PAD), jnp.float32)
    b1_row = b1_row.at[0, 0].set(params["lin1_b"].astype(jnp.float32)[0])
    packed = jnp.concatenate([w1, b1_row], axis=0)                       # (4, C_PAD)

    return {"table": table, "w_cat": w_cat, "packed": packed}


# ----------------------------------- wrapper --------------------------------------
@functools.partial(jax.jit, static_argnames=("b_tile",))
def cnn_forward(token_ids, prepped, b_tile=16):
    """token_ids: (B, L) int32.  prepped: output of prepare_params()."""
    B, L = token_ids.shape
    assert L == LENGTH
    # Pad batch to a multiple of b_tile (padded rows use token 0, sliced off below).
    Bp = ((B + b_tile - 1) // b_tile) * b_tile
    ids = token_ids.astype(jnp.int32)
    if Bp != B:
        ids = jnp.pad(ids, ((0, Bp - B), (0, 0)))
    ids = ids.reshape(Bp * L, 1)

    grid = (Bp // b_tile,)
    nl_tile = b_tile * L

    def full(shape):                 # whole-array block, same tile every grid step
        return pl.BlockSpec(shape, lambda i: (0,) * len(shape))

    # Advisory cost estimate so XLA can overlap this tiny custom call.
    flops = 2 * Bp * L * (VOCAB_PAD * D_AUG + D_AUG * N_TAPS * C_PAD)
    bytes_accessed = 4 * (prepped["table"].size + prepped["w_cat"].size
                          + prepped["packed"].size + ids.size + Bp)

    out = pl.pallas_call(
        cnn_kernel,
        out_shape=jax.ShapeDtypeStruct((Bp, 1), jnp.float32),
        grid=grid,
        in_specs=[
            pl.BlockSpec((nl_tile, 1), lambda i: (i, 0)),   # token ids (per batch tile)
            full((VOCAB_PAD, D_AUG)),                       # embedding table (+1 column)
            full((D_AUG, N_TAPS * C_PAD)),                  # fused conv weights (+bias row)
            full((4, C_PAD)),                               # packed linear weight + bias
        ],
        out_specs=pl.BlockSpec((b_tile, 1), lambda i: (i, 0)),
        compiler_params=pltpu.CompilerParams(
            dimension_semantics=("parallel",)),             # shards batch tiles on v7x 2-TC
        cost_estimate=pl.CostEstimate(flops=flops, transcendentals=Bp,
                                      bytes_accessed=bytes_accessed),
    )(ids, prepped["table"], prepped["w_cat"], prepped["packed"])
    return out[:B]


# ------------------------------ deterministic params ------------------------------
def init_params(key):
    ks = jax.random.split(key, 10)
    scale = 0.1
    return {
        "emb":     jax.random.normal(ks[0], (VOCAB, INPUT_SIZE), jnp.float32) * scale,
        "conv3_w": jax.random.normal(ks[1], (N_FILT, 1, 2, INPUT_SIZE), jnp.float32) * scale,
        "conv3_b": jax.random.normal(ks[2], (N_FILT,), jnp.float32) * scale,
        "conv4_w": jax.random.normal(ks[3], (N_FILT, 1, 3, INPUT_SIZE), jnp.float32) * scale,
        "conv4_b": jax.random.normal(ks[4], (N_FILT,), jnp.float32) * scale,
        "conv5_w": jax.random.normal(ks[5], (N_FILT, 1, 4, INPUT_SIZE), jnp.float32) * scale,
        "conv5_b": jax.random.normal(ks[6], (N_FILT,), jnp.float32) * scale,
        "lin1_w":  jax.random.normal(ks[7], (1, 300), jnp.float32) * scale,
        "lin1_b":  jax.random.normal(ks[8], (1,), jnp.float32) * scale,
        # linear2..linear6 exist in __init__ but are unused in forward(); omitted.
    }


# ------------------------------ pure-JAX reference ---------------------------------
def cnn_reference(token_ids, params):
    emb = jnp.take(params["emb"], token_ids, axis=0)                          # (B, L, D)
    B, L, D = emb.shape

    def conv_pool(w, b, k):
        lk = L - k + 1
        windows = jnp.stack([emb[:, dt:dt + lk, :] for dt in range(k)], axis=2)  # (B,lk,k,D)
        s = jnp.einsum("btkd,ckd->btc", windows, w[:, 0, :, :]) + b[None, None, :]
        s = jax.nn.relu(s)
        return jax.nn.relu(jnp.max(s, axis=1))                                # (B, 100)

    p2 = conv_pool(params["conv3_w"], params["conv3_b"], 2)
    p3 = conv_pool(params["conv4_w"], params["conv4_b"], 3)
    p4 = conv_pool(params["conv5_w"], params["conv5_b"], 4)
    feat = jnp.stack([p2, p3, p4], axis=-1).reshape(token_ids.shape[0], 300)   # concat order
    logit = feat @ params["lin1_w"].T + params["lin1_b"][None, :]
    return jax.nn.sigmoid(logit)                                               # (B, 1)


# ------------------------------------- main ----------------------------------------
if __name__ == "__main__":
    key = jax.random.PRNGKey(0)
    pkey, xkey = jax.random.split(key)
    params = init_params(pkey)
    prepped = prepare_params(params)          # one-time layout/pad, outside the hot path
    token_ids = jax.random.randint(xkey, (BATCH, LENGTH), 0, VOCAB, dtype=jnp.int32)

    b_tile = _default_b_tile()                # 16 on v5e (nl=128), 32 on v6e/v7x (nl=256)
    out = jax.block_until_ready(cnn_forward(token_ids, prepped, b_tile=b_tile))
    ref = jax.block_until_ready(cnn_reference(token_ids, params))

    np.testing.assert_allclose(np.asarray(out), np.asarray(ref), rtol=1e-5, atol=1e-5)
    assert out.shape == (BATCH, 1) and out.dtype == jnp.float32

    print("KERNEL_OK")
</pallas_src>

<mosaic_0001>
module attributes {stable_mosaic.version = 11 : i64} {
  func.func @cnn_kernel(%arg0: i32, %arg1: memref<128x1xi32, #tpu.memory_space<vmem>>, %arg2: memref<128x33xf32, #tpu.memory_space<vmem>>, %arg3: memref<33x1152xf32, #tpu.memory_space<vmem>>, %arg4: memref<4x128xf32, #tpu.memory_space<vmem>>, %arg5: memref<16x1xf32, #tpu.memory_space<vmem>>) attributes {dimension_semantics = [#tpu.dimension_semantics<parallel>], iteration_bounds = array<i64: 1>, scalar_prefetch = 0 : i64, scratch_operands = 0 : i64, tpu.core_type = #tpu.core_type<tc>, window_params = [{transform_indices = @transform_0, window_bounds = array<i64: 128, 1>}, {pipeline_mode = #tpu.pipeline_mode<synchronous>, transform_indices = @transform_1, window_bounds = array<i64: 128, 33>}, {pipeline_mode = #tpu.pipeline_mode<synchronous>, transform_indices = @transform_2, window_bounds = array<i64: 33, 1152>}, {pipeline_mode = #tpu.pipeline_mode<synchronous>, transform_indices = @transform_3, window_bounds = array<i64: 4, 128>}, {transform_indices = @transform_4, window_bounds = array<i64: 16, 1>}]} {
    %c0 = arith.constant 0 : index
    %c0_0 = arith.constant 0 : index
    %0 = vector.load %arg1[%c0, %c0_0] : memref<128x1xi32, #tpu.memory_space<vmem>>, vector<128x1xi32>
    %1 = tpu.iota {dimensions = array<i32: 1>} : vector<128x128xi32>
    %2 = vector.broadcast %0 : vector<128x1xi32> to vector<128x128xi32>
    %3 = arith.cmpi eq, %1, %2 : vector<128x128xi32>
    %4 = arith.extui %3 : vector<128x128xi1> to vector<128x128xi32>
    %5 = arith.sitofp %4 : vector<128x128xi32> to vector<128x128xf32>
    %c0_1 = arith.constant 0 : index
    %c0_2 = arith.constant 0 : index
    %6 = vector.load %arg2[%c0_1, %c0_2] : memref<128x33xf32, #tpu.memory_space<vmem>>, vector<128x33xf32>
    %cst = arith.constant dense<0.000000e+00> : vector<128x33xf32>
    %7 = tpu.matmul %5, %6, %cst {dimension_numbers = #tpu.dot_dimension_numbers<[1], [0], [0], [1], [0, 0, 1, 1], [], []>} : vector<128x128xf32>, vector<128x33xf32>, vector<128x33xf32> -> vector<128x33xf32>
    %c0_3 = arith.constant 0 : index
    %c0_4 = arith.constant 0 : index
    %8 = vector.load %arg3[%c0_3, %c0_4] : memref<33x1152xf32, #tpu.memory_space<vmem>>, vector<33x1152xf32>
    %cst_5 = arith.constant dense<0.000000e+00> : vector<128x1152xf32>
    %9 = tpu.matmul %7, %8, %cst_5 {dimension_numbers = #tpu.dot_dimension_numbers<[1], [0], [0], [1], [0, 0, 1, 1], [], []>} : vector<128x33xf32>, vector<33x1152xf32>, vector<128x1152xf32> -> vector<128x1152xf32>
    %10 = vector.shape_cast %9 : vector<128x1152xf32> to vector<16x8x1152xf32>
    %cst_6 = arith.constant 0.000000e+00 : f32
    %11 = vector.broadcast %cst_6 : f32 to vector<16x128xf32>
    %12 = vector.extract_strided_slice %10 {offsets = [0, 0, 0], sizes = [16, 7, 128], strides = [1, 1, 1]} : vector<16x8x1152xf32> to vector<16x7x128xf32>
    %13 = vector.extract_strided_slice %10 {offsets = [0, 1, 128], sizes = [16, 7, 128], strides = [1, 1, 1]} : vector<16x8x1152xf32> to vector<16x7x128xf32>
    %14 = arith.addf %12, %13 : vector<16x7x128xf32>
    %cst_7 = arith.constant dense<0xFF800000> : vector<16x128xf32>
    %15 = vector.multi_reduction <maximumf>, %14, %cst_7 [1] : vector<16x7x128xf32> to vector<16x128xf32>
    %cst_8 = arith.constant 0.000000e+00 : f32
    %16 = vector.broadcast %cst_8 : f32 to vector<16x128xf32>
    %17 = arith.maximumf %15, %16 : vector<16x128xf32>
    %c0_9 = arith.constant 0 : index
    %c0_10 = arith.constant 0 : index
    %18 = vector.load %arg4[%c0_9, %c0_10] : memref<4x128xf32, #tpu.memory_space<vmem>>, vector<1x128xf32>
    %19 = vector.broadcast %18 : vector<1x128xf32> to vector<16x128xf32>
    %20 = arith.mulf %17, %19 : vector<16x128xf32>
    %21 = arith.addf %11, %20 : vector<16x128xf32>
    %22 = vector.extract_strided_slice %10 {offsets = [0, 0, 256], sizes = [16, 6, 128], strides = [1, 1, 1]} : vector<16x8x1152xf32> to vector<16x6x128xf32>
    %23 = vector.extract_strided_slice %10 {offsets = [0, 1, 384], sizes = [16, 6, 128], strides = [1, 1, 1]} : vector<16x8x1152xf32> to vector<16x6x128xf32>
    %24 = arith.addf %22, %23 : vector<16x6x128xf32>
    %25 = vector.extract_strided_slice %10 {offsets = [0, 2, 512], sizes = [16, 6, 128], strides = [1, 1, 1]} : vector<16x8x1152xf32> to vector<16x6x128xf32>
    %26 = arith.addf %24, %25 : vector<16x6x128xf32>
    %cst_11 = arith.constant dense<0xFF800000> : vector<16x128xf32>
    %27 = vector.multi_reduction <maximumf>, %26, %cst_11 [1] : vector<16x6x128xf32> to vector<16x128xf32>
    %cst_12 = arith.constant 0.000000e+00 : f32
    %28 = vector.broadcast %cst_12 : f32 to vector<16x128xf32>
    %29 = arith.maximumf %27, %28 : vector<16x128xf32>
    %c1 = arith.constant 1 : index
    %c0_13 = arith.constant 0 : index
    %30 = vector.load %arg4[%c1, %c0_13] : memref<4x128xf32, #tpu.memory_space<vmem>>, vector<1x128xf32>
    %31 = vector.broadcast %30 : vector<1x128xf32> to vector<16x128xf32>
    %32 = arith.mulf %29, %31 : vector<16x128xf32>
    %33 = arith.addf %21, %32 : vector<16x128xf32>
    %34 = vector.extract_strided_slice %10 {offsets = [0, 0, 640], sizes = [16, 5, 128], strides = [1, 1, 1]} : vector<16x8x1152xf32> to vector<16x5x128xf32>
    %35 = vector.extract_strided_slice %10 {offsets = [0, 1, 768], sizes = [16, 5, 128], strides = [1, 1, 1]} : vector<16x8x1152xf32> to vector<16x5x128xf32>
    %36 = arith.addf %34, %35 : vector<16x5x128xf32>
    %37 = vector.extract_strided_slice %10 {offsets = [0, 2, 896], sizes = [16, 5, 128], strides = [1, 1, 1]} : vector<16x8x1152xf32> to vector<16x5x128xf32>
    %38 = arith.addf %36, %37 : vector<16x5x128xf32>
    %39 = vector.extract_strided_slice %10 {offsets = [0, 3, 1024], sizes = [16, 5, 128], strides = [1, 1, 1]} : vector<16x8x1152xf32> to vector<16x5x128xf32>
    %40 = arith.addf %38, %39 : vector<16x5x128xf32>
    %cst_14 = arith.constant dense<0xFF800000> : vector<16x128xf32>
    %41 = vector.multi_reduction <maximumf>, %40, %cst_14 [1] : vector<16x5x128xf32> to vector<16x128xf32>
    %cst_15 = arith.constant 0.000000e+00 : f32
    %42 = vector.broadcast %cst_15 : f32 to vector<16x128xf32>
    %43 = arith.maximumf %41, %42 : vector<16x128xf32>
    %c2 = arith.constant 2 : index
    %c0_16 = arith.constant 0 : index
    %44 = vector.load %arg4[%c2, %c0_16] : memref<4x128xf32, #tpu.memory_space<vmem>>, vector<1x128xf32>
    %45 = vector.broadcast %44 : vector<1x128xf32> to vector<16x128xf32>
    %46 = arith.mulf %43, %45 : vector<16x128xf32>
    %47 = arith.addf %33, %46 : vector<16x128xf32>
    %c3 = arith.constant 3 : index
    %c0_17 = arith.constant 0 : index
    %48 = vector.load %arg4[%c3, %c0_17] : memref<4x128xf32, #tpu.memory_space<vmem>>, vector<1x128xf32>
    %49 = vector.broadcast %48 : vector<1x128xf32> to vector<16x128xf32>
    %50 = arith.addf %47, %49 : vector<16x128xf32>
    %cst_18 = arith.constant dense<0.000000e+00> : vector<16xf32>
    %51 = vector.multi_reduction <add>, %50, %cst_18 [1] : vector<16x128xf32> to vector<16xf32>
    %52 = vector.shape_cast %51 : vector<16xf32> to vector<16x1xf32>
    %53 = arith.negf %52 : vector<16x1xf32>
    %54 = math.exp %53 : vector<16x1xf32>
    %cst_19 = arith.constant 1.000000e+00 : f32
    %55 = vector.broadcast %cst_19 : f32 to vector<16x1xf32>
    %56 = arith.addf %55, %54 : vector<16x1xf32>
    %57 = arith.divf %55, %56 : vector<16x1xf32>
    %c0_20 = arith.constant 0 : index
    %c0_21 = arith.constant 0 : index
    %58 = vector.load %arg5[%c0_20, %c0_21] : memref<16x1xf32, #tpu.memory_space<vmem>>, vector<16x1xf32>
    tpu.vector_store %arg5[%c0_20, %c0_21], %57 {strides = array<i32>} : memref<16x1xf32, #tpu.memory_space<vmem>>, vector<16x1xf32>,
    return
  }
  func.func @transform_0(%arg0: i32) -> (i32, i32) {
    %c0_i32 = arith.constant 0 : i32
    %c0_i32_0 = arith.constant 0 : i32
    return %arg0, %c0_i32 : i32, i32
  }
  func.func @transform_1(%arg0: i32) -> (i32, i32) {
    %c0_i32 = arith.constant 0 : i32
    %c0_i32_0 = arith.constant 0 : i32
    %c0_i32_1 = arith.constant 0 : i32
    return %c0_i32, %c0_i32_0 : i32, i32
  }
  func.func @transform_2(%arg0: i32) -> (i32, i32) {
    %c0_i32 = arith.constant 0 : i32
    %c0_i32_0 = arith.constant 0 : i32
    %c0_i32_1 = arith.constant 0 : i32
    return %c0_i32, %c0_i32_0 : i32, i32
  }
  func.func @transform_3(%arg0: i32) -> (i32, i32) {
    %c0_i32 = arith.constant 0 : i32
    %c0_i32_0 = arith.constant 0 : i32
    %c0_i32_1 = arith.constant 0 : i32
    return %c0_i32, %c0_i32_0 : i32, i32
  }
  func.func @transform_4(%arg0: i32) -> (i32, i32) {
    %c0_i32 = arith.constant 0 : i32
    %c0_i32_0 = arith.constant 0 : i32
    return %arg0, %c0_i32 : i32, i32
  }
}

</mosaic_0001>

<bundles_post_ra>
// kernel: cnn_forward.1
= control target key start
LH: loop header
LB: loop body
LE: loop exit
PB: predicated region body
PF: predicated region fallthrough
CT: control target
= control target key end

     0   :  { %9 = vsyncpa [#allocation3], 0  ;;  %s2585_s15 = smov [#allocation2]   ;;  %s3491_s0 = inlined_call_operand.vmem [shape: s32[128,1], index: 0, kind: input, shape index: {}]   ;;  %s3492_s1 = inlined_call_operand.vmem [shape: f32[128,33], index: 1, kind: input, shape index: {}]   ;;  %s3493_s2 = inlined_call_operand.hbm [shape: f32[33,1152], index: 2, kind: input, shape index: {}]   ;;  %s3494_s3 = inlined_call_operand.vmem [shape: f32[4,128], index: 3, kind: input, shape index: {}]   ;;  %s3495_s4 = inlined_call_operand.vmem [shape: f32[16,1], index: 4, kind: output, shape index: {}]  }
   0x1   :  { %s19_s16 = sshll.u32 %s2585_s15, 4  ;;  %s2561_s19 = scalar_lea.hbm %s3493_s2, 5760  ;;  %s20_s16 = int_to_ptr.vmem [resolvable:$true] %s19_s16 }
   0x2   :  { %p2562_p0 = scmp.ne.s32.totalorder %s3493_s2, %s2561_s19  ;;  %p2565_p1 = scmp.lt.u32.totalorder %s2561_s19, %s3493_s2 }
   0x4   :  { %p2567_p2 = pnand %p2565_p1, %p2562_p0 }
   0x6   :  { %2570 = shalt.err (!%p2567_p2)
}
   0x7   :  { %s2571_s24 = scalar_lea.vmem %s20_s16, 5760  ;;  %p2576_p4 = scmp.lt.s32.totalorder %s20_s16, %s20_s16 }
   0x8   :  { %p2572_p3 = scmp.ne.s32.totalorder %s20_s16, %s2571_s24  ;;  %p2577_p5 = scmp.lt.s32.totalorder %s2571_s24, %s2571_s24 }
   0xa   :  { %p2578_p6 = por %p2577_p5, %p2576_p4 }
   0xc   :  { %p2579_p7 = pnand %p2578_p6, %p2572_p3 }
   0xe   :  { %2582 = shalt.err (!%p2579_p7)
}
   0xf   :  { %s2586_s25 = smov 1152   ;;  %s2587_s26 = smov 72  }
  0x10   :  { %25 = dma.hbm_to_vmem [thread:$0]  %s3493_s2, 5760, %s20_s16, [#allocation3], %s2586_s25, %s2586_s25, %s2587_s26  }
  0x11   :  { %2583 = dma.done.wait [#allocation3], 5760  }
  0x12   :  { %2584 = vsyncadd [#allocation3], 4294961536  ;;  %v2588_v0 = vmov 0   ;;  %v33_v1 = vld [vmem:[%s3491_s0 + $0x10] sm:$0xff]  ;;  %v31_v2 = vld [vmem:[%s3491_s0] sm:$0xff]  ;;  %v47_v56 = vlaneseq }
  0x13   :  { %2552 = vset.pattern.permute.xlu1 %v2588_v0  ;;  %2551 = vset.pattern.permute.xlu0 %v2588_v0  ;;  %v34_v3 = vld [vmem:[%s3491_s0 + $0x18] sm:$0xff]  ;;  %v32_v4 = vld [vmem:[%s3491_s0 + $0x8] sm:$0xff]  ;;  %v145_v6 = vld [vmem:[%s3492_s1] sm:$0xff]  ;;  %v2589_v0 = vmov 1.0  }
  0x14   :  { %56 = vperm.xlu1 %2552, %v33_v1   ;;  %50 = vperm.xlu0 %2551, %v31_v2   ;;  %v36_v5 = vld [vmem:[%s3491_s0 + $0x28] sm:$0xff]  ;;  %v35_v8 = vld [vmem:[%s3491_s0 + $0x20] sm:$0xff]  ;;  %v147_v10 = vld [vmem:[%s3492_s1 + $0x10] sm:$0xff]  ;;  %v48_v57 = vand.u32 127, %v47_v56 }
  0x15   :  { %v146_v7 = vld [vmem:[%s3492_s1 + $0x8] sm:$0xff]  ;;  %v148_v11 = vld [vmem:[%s3492_s1 + $0x18] sm:$0xff]  ;;  %v149_v13 = vld [vmem:[%s3492_s1 + $0x20] sm:$0xff] }
  0x16   :  { %v2467_v9 = vpack.c.bf16 %v146_v7, %v145_v6  ;;  %v2471_v12 = vpack.c.bf16 %v148_v11, %v147_v10  ;;  %v150_v14 = vld [vmem:[%s3492_s1 + $0x28] sm:$0xff]  ;;  %v38_v15 = vld [vmem:[%s3491_s0 + $0x38] sm:$0xff]  ;;  %v37_v16 = vld [vmem:[%s3491_s0 + $0x30] sm:$0xff] }
  0x17   :  { %v2475_v17 = vpack.c.bf16 %v150_v14, %v149_v13  ;;  %v151_v18 = vld [vmem:[%s3492_s1 + $0x30] sm:$0xff]  ;;  %v152_v19 = vld [vmem:[%s3492_s1 + $0x38] sm:$0xff]  ;;  %v40_v20 = vld [vmem:[%s3491_s0 + $0x48] sm:$0xff] }
  0x18   :  { %59 = vperm.xlu1 %2552, %v34_v3   ;;  %53 = vperm.xlu0 %2551, %v32_v4   ;;  %v39_v21 = vld [vmem:[%s3491_s0 + $0x40] sm:$0xff]  ;;  %v2479_v22 = vpack.c.bf16 %v152_v19, %v151_v18  ;;  %v154_v24 = vld [vmem:[%s3492_s1 + $0x48] sm:$0xff]  ;;  %v42_v25 = vld [vmem:[%s3491_s0 + $0x58] sm:$0xff] }
  0x19   :  { %2468 = vmatprep.subr.bf16.mxu0 %v2467_v9  ;;  %v153_v23 = vld [vmem:[%s3492_s1 + $0x40] sm:$0xff]  ;;  %v41_v26 = vld [vmem:[%s3491_s0 + $0x50] sm:$0xff]  ;;  %v156_v29 = vld [vmem:[%s3492_s1 + $0x58] sm:$0xff] }
  0x1a   :  { %2470 = vmatpush3.bf16.msra.mxu0 %v2467_v9  ;;  %v2483_v27 = vpack.c.bf16 %v154_v24, %v153_v23  ;;  %v155_v28 = vld [vmem:[%s3492_s1 + $0x50] sm:$0xff]  ;;  %v44_v30 = vld [vmem:[%s3491_s0 + $0x68] sm:$0xff]  ;;  %v43_v31 = vld [vmem:[%s3491_s0 + $0x60] sm:$0xff]  ;;  %v2590_v24 = vmov 0.0  }
  0x1b   :  { %2472 = vmatprep.subr.bf16.mxu0 %v2471_v12  ;;  %v2487_v32 = vpack.c.bf16 %v156_v29, %v155_v28  ;;  %v157_v33 = vld [vmem:[%s3492_s1 + $0x60] sm:$0xff]  ;;  %v158_v34 = vld [vmem:[%s3492_s1 + $0x68] sm:$0xff]  ;;  %v46_v35 = vld [vmem:[%s3491_s0 + $0x78] sm:$0xff]  ;;  %492 = vmatprep.mubr.f32.mxu1 %v2590_v24 }
  0x1c   :  { %65 = vperm.xlu1 %2552, %v36_v5   ;;  %62 = vperm.xlu0 %2551, %v35_v8   ;;  %v45_v36 = vld [vmem:[%s3491_s0 + $0x70] sm:$0xff]  ;;  %v2491_v37 = vpack.c.bf16 %v158_v34, %v157_v33  ;;  %v160_v39 = vld [vmem:[%s3492_s1 + $0x78] sm:$0xff]  ;;  %v307_v41 = vld [vmem:[#allocation2 + $0x8] sm:$0xff] }
  0x1d   :  { %v159_v38 = vld [vmem:[%s3492_s1 + $0x70] sm:$0xff]  ;;  %v309_v43 = vld [vmem:[#allocation2 + $0x18] sm:$0xff]  ;;  %v318_v45 = vld [vmem:[#allocation2 + $0x60] sm:$0xff] }
  0x1e   :  { %2474 = vmatpush3.bf16.msra.mxu0 %v2471_v12  ;;  %v2495_v40 = vpack.c.bf16 %v160_v39, %v159_v38  ;;  %v316_v42 = vld [vmem:[#allocation2 + $0x50] sm:$0xff]  ;;  %v306_v46 = vld [vmem:[#allocation2] sm:$0xff]  ;;  %v315_v47 = vld [vmem:[#allocation2 + $0x48] sm:$0xff]  ;;  %v2724_v48 = vpack.c.bf16 %v318_v45, %v309_v43 }
  0x1f   :  { %2476 = vmatprep.subr.bf16.mxu0 %v2475_v17  ;;  %v2499_v44 = vpack.c.bf16 %v316_v42, %v307_v41  ;;  %v2501_v49 = vpack.c.bf16 %v315_v47, %v306_v46  ;;  %v325_v50 = vld [vmem:[#allocation2 + $0x98] sm:$0xff]  ;;  %v334_v51 = vld [vmem:[#allocation2 + $0xe0] sm:$0xff]  ;;  %v324_v53 = vld [vmem:[#allocation2 + $0x90] sm:$0xff] }
  0x20   :  { %71 = vperm.xlu1 %2552, %v38_v15   ;;  %68 = vperm.xlu0 %2551, %v37_v16   ;;  %v2503_v52 = vpack.c.bf16 %v334_v51, %v325_v50  ;;  %v333_v54 = vld [vmem:[#allocation2 + $0xd8] sm:$0xff]  ;;  %v308_v60 = vld [vmem:[#allocation2 + $0x10] sm:$0xff]  ;;  %v327_v62 = vld [vmem:[#allocation2 + $0xa8] sm:$0xff] }
  0x21   :  { %2500 = vmatprep.subr.bf16.mxu1 %v2499_v44  ;;  %v2505_v55 = vpack.c.bf16 %v333_v54, %v324_v53  ;;  %v317_v61 = vld [vmem:[#allocation2 + $0x58] sm:$0xff]  ;;  %v336_v63 = vld [vmem:[#allocation2 + $0xf0] sm:$0xff]  ;;  %v326_v5 = vld [vmem:[#allocation2 + $0xa0] sm:$0xff] }
  0x22   :  { %2478 = vmatpush3.bf16.msra.mxu0 %v2475_v17  ;;  %2502 = vmatpush1.bf16.msra.mxu1 %v2501_v49  ;;  %v2727_v1 = vpack.c.bf16 %v317_v61, %v308_v60  ;;  %v2729_v4 = vpack.c.bf16 %v336_v63, %v327_v62  ;;  %v335_v6 = vld [vmem:[#allocation2 + $0xe8] sm:$0xff]  ;;  %v344_v23 = vld [vmem:[#allocation2 + $0x130] sm:$0x1]  ;;  %v321_v29 = vld [vmem:[#allocation2 + $0x78] sm:$0xff] }
  0x23   :  { %2480 = vmatprep.subr.bf16.mxu0 %v2479_v22  ;;  %2504 = vmatprep.subr.bf16.mxu1 %v2503_v52  ;;  %v2732_v7 = vpack.c.bf16 %v335_v6, %v326_v5  ;;  %v312_v28 = vld [vmem:[#allocation2 + $0x30] sm:$0xff]  ;;  %v331_v33 = vld [vmem:[#allocation2 + $0xc8] sm:$0xff]  ;;  %v349_v45 = vld [vmem:[#allocation2 + $0x158] sm:$0x1] }
  0x24   :  { %77 = vperm.xlu1 %2552, %v40_v20   ;;  %74 = vperm.xlu0 %2551, %v39_v21   ;;  %v343_v20 = vld [vmem:[#allocation2 + $0x128] sm:$0x1]  ;;  %v345_v21 = vld [vmem:[#allocation2 + $0x138] sm:$0x1]  ;;  %v340_v34 = vld [vmem:[#allocation2 + $0x110] sm:$0xff] }
  0x25   :  { %v2527_v38 = vpack.c.bf16 %v340_v34, %v331_v33  ;;  %v311_v41 = vld [vmem:[#allocation2 + $0x28] sm:$0xff]  ;;  %v320_v42 = vld [vmem:[#allocation2 + $0x70] sm:$0xff]  ;;  %v329_v60 = vld [vmem:[#allocation2 + $0xb8] sm:$0xff] }
  0x26   :  { %2482 = vmatpush3.bf16.msra.mxu0 %v2479_v22  ;;  %2506 = vmatpush1.bf16.msra.mxu1 %v2505_v55  ;;  %v342_v22 = vld [vmem:[#allocation2 + $0x120] sm:$0x1]  ;;  %v2515_v46 = vpack.c.bf16 %v320_v42, %v311_v41  ;;  %v348_v47 = vld [vmem:[#allocation2 + $0x150] sm:$0x1]  ;;  %v323_v5 = vld [vmem:[#allocation2 + $0x88] sm:$0xff] }
  0x27   :  { %2484 = vmatprep.subr.bf16.mxu0 %v2483_v27  ;;  %v338_v61 = vld [vmem:[#allocation2 + $0x100] sm:$0xff]  ;;  %v332_v6 = vld [vmem:[#allocation2 + $0xd0] sm:$0xff] }
  0x28   :  { %83 = vperm.xlu1 %2552, %v42_v25   ;;  %80 = vperm.xlu0 %2551, %v41_v26   ;;  %v313_v25 = vld [vmem:[#allocation2 + $0x38] sm:$0xff]  ;;  %v322_v26 = vld [vmem:[#allocation2 + $0x80] sm:$0xff]  ;;  %v2519_v63 = vpack.c.bf16 %v338_v61, %v329_v60 }
  0x2a   :  { %2486 = vmatpush3.bf16.msra.mxu0 %v2483_v27  ;;  %v2523_v27 = vpack.c.bf16 %v322_v26, %v313_v25 }
  0x2b   :  { %2488 = vmatprep.subr.bf16.mxu0 %v2487_v32 }
  0x2c   :  { %89 = vperm.xlu1 %2552, %v44_v30   ;;  %86 = vperm.xlu0 %2551, %v43_v31  }
  0x2e   :  { %2490 = vmatpush3.bf16.msra.mxu0 %v2487_v32  ;;  %v2525_v32 = vpack.c.bf16 %v321_v29, %v312_v28 }
  0x2f   :  { %2492 = vmatprep.subr.bf16.mxu0 %v2491_v37 }
  0x30   :  { %95 = vperm.xlu1 %2552, %v46_v35   ;;  %92 = vperm.xlu0 %2551, %v45_v36   ;;  %v330_v35 = vld [vmem:[#allocation2 + $0xc0] sm:$0xff]  ;;  %v339_v36 = vld [vmem:[#allocation2 + $0x108] sm:$0xff] }
  0x32   :  { %2494 = vmatpush3.bf16.msra.mxu0 %v2491_v37 }
  0x33   :  { %2496 = vmatprep.subr.bf16.mxu0 %v2495_v40 }
  0x36   :  { %2498 = vmatpush3.bf16.msra.mxu0 %v2495_v40  ;;  %v2529_v40 = vpack.c.bf16 %v339_v36, %v330_v35 }
  0x37   :  { %2508 = vmatprep.subr.bf16.mxu0 %v2724_v48 }
  0x93   :  { %v57_v58 = vpop.permute.xlu1 %56  ;;  %v51_v59 = vpop.permute.xlu0 %50 }
  0x94   :  { %vm97_vm0 = vcmp.eq.s32.totalorder %v48_v57, %v51_v59  ;;  %vm99_vm1 = vcmp.eq.s32.totalorder %v48_v57, %v57_v58  ;;  %v310_v58 = vld [vmem:[#allocation2 + $0x20] sm:$0xff]  ;;  %v319_v59 = vld [vmem:[#allocation2 + $0x68] sm:$0xff] }
  0x95   :  { %2409 = vmatprep.mubr.msk.f32.mxu0 %vm97_vm0, %v2589_v0  ;;  %vm400_vm0 = vcmask 1040384   ;;  %v2517_v62 = vpack.c.bf16 %v319_v59, %v310_v58 }
  0x96   :  { %2229 = vmatprep.subr.msk.mxu1 %vm400_vm0, %v343_v20 }
  0x97   :  { %v60_v2 = vpop.permute.xlu1 %59  ;;  %v54_v3 = vpop.permute.xlu0 %53  ;;  %2230 = vmatpush1.msk.msra.mxu1 %vm400_vm0, %v342_v22 }
  0x98   :  { %vm98_vm2 = vcmp.eq.s32.totalorder %v48_v57, %v54_v3  ;;  %vm100_vm3 = vcmp.eq.s32.totalorder %v48_v57, %v60_v2  ;;  %2539 = vmatprep.subr.bf16.mxu1 %v2724_v48  ;;  %v347_v3 = vld [vmem:[#allocation2 + $0x148] sm:$0x1] }
  0x99   :  { %2410 = vmatmul.mubr.msk.f32.vlgmr.msra.gmra.mrb[0].mxu0 %vm98_vm2, %v2589_v0  ;;  %vm1281_vm2 = vcmask 1046528  }
  0x9a   :  { %2412 = vmatprep.mubr.msk.f32.mxu0 %vm99_vm1, %v2589_v0  ;;  %2510 = vmatpush1.bf16.msra.mxu0 %v2727_v1  ;;  %vm351_vm1 = vcmask 269312  }
  0x9b   :  { %v66_v8 = vpop.permute.xlu1 %65  ;;  %v63_v9 = vpop.permute.xlu0 %62  ;;  %2512 = vmatprep.subr.bf16.mxu0 %v2729_v4 }
  0x9c   :  { %vm101_vm4 = vcmp.eq.s32.totalorder %v48_v57, %v63_v9  ;;  %vm102_vm5 = vcmp.eq.s32.totalorder %v48_v57, %v66_v8  ;;  %v346_v8 = vld [vmem:[#allocation2 + $0x140] sm:$0x1] }
  0x9d   :  { %2413 = vmatmul.mubr.msk.f32.gmra.mrb[2].mxu0 %vm100_vm3, %v2589_v0  ;;  %vm1575_vm3 = vcmask 1045504  }
  0x9e   :  { %2415 = vmatprep.mubr.msk.f32.mxu0 %vm101_vm4, %v2589_v0  ;;  %2514 = vmatpush1.bf16.msra.mxu0 %v2732_v7  ;;  %vm1933_vm4 = vcmask 1044480  }
  0x9f   :  { %v72_v10 = vpop.permute.xlu1 %71  ;;  %v69_v11 = vpop.permute.xlu0 %68  ;;  %2247 = vmatprep.subr.msk.mxu0 %vm400_vm0, %v345_v21 }
  0xa0   :  { %vm103_vm6 = vcmp.eq.s32.totalorder %v48_v57, %v69_v11  ;;  %vm104_vm7 = vcmp.eq.s32.totalorder %v48_v57, %v72_v10  ;;  %v350_v11 = vld [vmem:[#allocation2 + $0x160] sm:$0x1] }
  0xa1   :  { %2416 = vmatmul.mubr.msk.f32.gmra.mrb[4].mxu0 %vm102_vm5, %v2589_v0  ;;  %vm2137_vm5 = vcmask 1041409  }
  0xa2   :  { %2418 = vmatprep.mubr.msk.f32.mxu0 %vm103_vm6, %v2589_v0  ;;  %2248 = vmatpush1.msk.msra.mxu0 %vm400_vm0, %v344_v23  ;;  %vm2140_vm6 = vcmask 1042434  }
  0xa3   :  { %v78_v12 = vpop.permute.xlu1 %77  ;;  %v75_v13 = vpop.permute.xlu0 %74  ;;  %2524 = vmatprep.subr.bf16.mxu0 %v2523_v27 }
  0xa4   :  { %vm105_vm8 = vcmp.eq.s32.totalorder %v48_v57, %v75_v13  ;;  %vm106_vm9 = vcmp.eq.s32.totalorder %v48_v57, %v78_v12 }
  0xa5   :  { %2419 = vmatmul.mubr.msk.f32.gmra.mrb[6].mxu0 %vm104_vm7, %v2589_v0  ;;  %vm2143_vm7 = vcmask 1043459  }
  0xa6   :  { %2421 = vmatprep.mubr.msk.f32.mxu0 %vm105_vm8, %v2589_v0  ;;  %vm2146_vm8 = vcmask 1044484  }
  0xa7   :  { %v84_v14 = vpop.permute.xlu1 %83  ;;  %v81_v15 = vpop.permute.xlu0 %80 }
  0xa8   :  { %vm107_vm10 = vcmp.eq.s32.totalorder %v48_v57, %v81_v15  ;;  %vm108_vm11 = vcmp.eq.s32.totalorder %v48_v57, %v84_v14 }
  0xa9   :  { %2422 = vmatmul.mubr.msk.f32.gmra.mrb[8].mxu0 %vm106_vm9, %v2589_v0  ;;  %vm2149_vm9 = vcmask 1045509  }
  0xaa   :  { %2424 = vmatprep.mubr.msk.f32.mxu0 %vm107_vm10, %v2589_v0  ;;  %vm2152_vm10 = vcmask 1046534  }
  0xab   :  { %v90_v16 = vpop.permute.xlu1 %89  ;;  %v87_v17 = vpop.permute.xlu0 %86 }
  0xac   :  { %vm109_vm12 = vcmp.eq.s32.totalorder %v48_v57, %v87_v17  ;;  %vm110_vm13 = vcmp.eq.s32.totalorder %v48_v57, %v90_v16 }
  0xad   :  { %2425 = vmatmul.mubr.msk.f32.gmra.mrb[10].mxu0 %vm108_vm11, %v2589_v0  ;;  %vm2155_vm11 = vcmask 1047559  }
  0xae   :  { %2427 = vmatprep.mubr.msk.f32.mxu0 %vm109_vm12, %v2589_v0  ;;  %vm2189_vm12 = vcmask 7168  }
  0xaf   :  { %v93_v18 = vpop.permute.xlu0 %92  ;;  %v96_v19 = vpop.permute.xlu1 %95 }
  0xb0   :  { %vm111_vm14 = vcmp.eq.s32.totalorder %v48_v57, %v93_v18  ;;  %vm112_vm15 = vcmp.eq.s32.totalorder %v48_v57, %v96_v19 }
  0xb1   :  { %2428 = vmatmul.mubr.msk.f32.gmra.mrb[12].mxu0 %vm110_vm13, %v2589_v0 }
  0xb2   :  { %2430 = vmatprep.mubr.msk.f32.mxu0 %vm111_vm14, %v2589_v0 }
  0xb5   :  { %2431 = vmatmul.mubr.msk.f32.gmra.mrb[14].mxu0 %vm112_vm15, %v2589_v0  ;;  %v328_v0 = vld [vmem:[#allocation2 + $0xb0] sm:$0xff] }
  0xb6   :  { %653 = vmatprep.mubr.f32.mxu0 %v2590_v24 }
 0x16c   :  { %v2743_v30 = vpop.f32.mrb[0].mxu0 }
 0x16d   :  { %v2745_v31 = vpop.f32.mrb[1].mxu0 }
 0x16e   :  { %2231 = vmatmul.mubr.msk.f32.vlgmr.msra.gmra.mrb[0].mxu1 %vm351_vm1, %v2745_v31  ;;  %2249 = vmatmul.mubr.msk.f32.vlgmr.msra.gmra.mrb[16].mxu0 %vm351_vm1, %v2745_v31 }
 0x16f   :  { %2542 = vmatpush1.bf16.msra.mxu1 %v2727_v1  ;;  %498 = vmatprep.mubr.f32.mxu1 %v2590_v24  ;;  %v337_v1 = vld [vmem:[#allocation2 + $0xf8] sm:$0xff] }
 0x170   :  { %v2753_v37 = vpop.f32.mrb[2].mxu0  ;;  %659 = vmatprep.mubr.f32.mxu0 %v2590_v24  ;;  %2540 = vmatprep.subr.bf16.mxu1 %v2729_v4  ;;  %v2521_v2 = vpack.c.bf16 %v337_v1, %v328_v0  ;;  %v314_v4 = vld [vmem:[#allocation2 + $0x40] sm:$0xff] }
 0x171   :  { %v2757_v39 = vpop.f32.mrb[3].mxu0  ;;  %2526 = vmatpush1.bf16.msra.mxu0 %v2525_v32  ;;  %v2531_v9 = vpack.c.bf16 %v323_v5, %v314_v4 }
 0x172   :  { %2232 = vmatmul.mubr.msk.f32.gmra.mrb[2].mxu1 %vm351_vm1, %v2743_v30  ;;  %2250 = vmatmul.mubr.msk.f32.gmra.mrb[18].mxu0 %vm351_vm1, %v2743_v30 }
 0x173   :  { %504 = vmatprep.mubr.f32.mxu1 %v2590_v24  ;;  %665 = vmatprep.mubr.f32.mxu0 %v2590_v24 }
 0x174   :  { %v2765_v43 = vpop.f32.mrb[4].mxu0  ;;  %2543 = vmatpush1.bf16.msra.mxu1 %v2732_v7  ;;  %2528 = vmatprep.subr.bf16.mxu0 %v2527_v38  ;;  %v341_v7 = vld [vmem:[#allocation2 + $0x118] sm:$0xff] }
 0x175   :  { %v2768_v44 = vpop.f32.mrb[5].mxu0  ;;  %2541 = vmatprep.subr.msk.mxu1 %vm400_vm0, %v345_v21  ;;  %2530 = vmatpush1.bf16.msra.mxu0 %v2529_v40  ;;  %v2535_v10 = vpack.c.bf16 %v341_v7, %v332_v6 }
 0x176   :  { %2233 = vmatmul.mubr.msk.f32.gmra.mrb[4].mxu1 %vm351_vm1, %v2757_v39  ;;  %2251 = vmatmul.mubr.msk.f32.gmra.mrb[20].mxu0 %vm351_vm1, %v2757_v39 }
 0x177   :  { %510 = vmatprep.mubr.f32.mxu1 %v2590_v24  ;;  %671 = vmatprep.mubr.f32.mxu0 %v2590_v24 }
 0x178   :  { %v2777_v48 = vpop.f32.mrb[6].mxu0  ;;  %2544 = vmatpush1.msk.msra.mxu1 %vm400_vm0, %v344_v23  ;;  %2283 = vmatprep.subr.msk.mxu0 %vm400_vm0, %v349_v45 }
 0x179   :  { %v2781_v49 = vpop.f32.mrb[7].mxu0  ;;  %2284 = vmatpush1.msk.msra.mxu0 %vm400_vm0, %v348_v47  ;;  %2516 = vmatprep.subr.bf16.mxu1 %v2515_v46 }
 0x17a   :  { %2234 = vmatmul.mubr.msk.f32.gmra.mrb[6].mxu1 %vm351_vm1, %v2753_v37  ;;  %2252 = vmatmul.mubr.msk.f32.gmra.mrb[22].mxu0 %vm351_vm1, %v2753_v37 }
 0x17b   :  { %516 = vmatprep.mubr.f32.mxu1 %v2590_v24  ;;  %677 = vmatprep.mubr.f32.mxu0 %v2590_v24 }
 0x17c   :  { %v2790_v50 = vpop.f32.mrb[8].mxu0 }
 0x17d   :  { %v2792_v51 = vpop.f32.mrb[9].mxu0 }
 0x17e   :  { %2235 = vmatmul.mubr.msk.f32.gmra.mrb[8].mxu1 %vm351_vm1, %v2768_v44  ;;  %2253 = vmatmul.mubr.msk.f32.gmra.mrb[24].mxu0 %vm351_vm1, %v2768_v44 }
 0x17f   :  { %522 = vmatprep.mubr.f32.mxu1 %v2590_v24  ;;  %683 = vmatprep.mubr.f32.mxu0 %v2590_v24 }
 0x180   :  { %v2800_v52 = vpop.f32.mrb[10].mxu0 }
 0x181   :  { %v2802_v53 = vpop.f32.mrb[11].mxu0 }
 0x182   :  { %2236 = vmatmul.mubr.msk.f32.gmra.mrb[10].mxu1 %vm351_vm1, %v2765_v43  ;;  %2254 = vmatmul.mubr.msk.f32.gmra.mrb[26].mxu0 %vm351_vm1, %v2765_v43 }
 0x183   :  { %528 = vmatprep.mubr.f32.mxu1 %v2590_v24  ;;  %689 = vmatprep.mubr.f32.mxu0 %v2590_v24 }
 0x184   :  { %v2810_v54 = vpop.f32.mrb[12].mxu0 }
 0x185   :  { %v2812_v55 = vpop.f32.mrb[13].mxu0 }
 0x186   :  { %2237 = vmatmul.mubr.msk.f32.gmra.mrb[12].mxu1 %vm351_vm1, %v2781_v49  ;;  %2255 = vmatmul.mubr.msk.f32.gmra.mrb[28].mxu0 %vm351_vm1, %v2781_v49 }
 0x187   :  { %534 = vmatprep.mubr.f32.mxu1 %v2590_v24  ;;  %695 = vmatprep.mubr.f32.mxu0 %v2590_v24 }
 0x188   :  { %v2820_v56 = vpop.f32.mrb[14].mxu0 }
 0x189   :  { %v2822_v57 = vpop.f32.mrb[15].mxu0 }
 0x18a   :  { %2238 = vmatmul.mubr.msk.f32.gmra.mrb[14].mxu1 %vm351_vm1, %v2777_v48  ;;  %2256 = vmatmul.mubr.msk.f32.gmra.mrb[30].mxu0 %vm351_vm1, %v2777_v48 }
 0x18b   :  { %540 = vmatprep.mubr.f32.mxu1 %v2590_v24  ;;  %701 = vmatprep.mubr.f32.mxu0 %v2590_v24 }
 0x18e   :  { %2239 = vmatmul.mubr.msk.f32.gmra.mrb[16].mxu1 %vm351_vm1, %v2792_v51  ;;  %2257 = vmatmul.mubr.msk.f32.gmra.mrb[32].mxu0 %vm351_vm1, %v2792_v51 }
 0x18f   :  { %546 = vmatprep.mubr.f32.mxu1 %v2590_v24  ;;  %707 = vmatprep.mubr.f32.mxu0 %v2590_v24 }
 0x192   :  { %2240 = vmatmul.mubr.msk.f32.gmra.mrb[18].mxu1 %vm351_vm1, %v2790_v50  ;;  %2258 = vmatmul.mubr.msk.f32.gmra.mrb[34].mxu0 %vm351_vm1, %v2790_v50 }
 0x193   :  { %552 = vmatprep.mubr.f32.mxu1 %v2590_v24  ;;  %713 = vmatprep.mubr.f32.mxu0 %v2590_v24 }
 0x196   :  { %2241 = vmatmul.mubr.msk.f32.gmra.mrb[20].mxu1 %vm351_vm1, %v2802_v53  ;;  %2259 = vmatmul.mubr.msk.f32.gmra.mrb[36].mxu0 %vm351_vm1, %v2802_v53 }
 0x197   :  { %558 = vmatprep.mubr.f32.mxu1 %v2590_v24  ;;  %719 = vmatprep.mubr.f32.mxu0 %v2590_v24 }
 0x19a   :  { %2242 = vmatmul.mubr.msk.f32.gmra.mrb[22].mxu1 %vm351_vm1, %v2800_v52  ;;  %2260 = vmatmul.mubr.msk.f32.gmra.mrb[38].mxu0 %vm351_vm1, %v2800_v52 }
 0x19b   :  { %564 = vmatprep.mubr.f32.mxu1 %v2590_v24  ;;  %725 = vmatprep.mubr.f32.mxu0 %v2590_v24 }
 0x19e   :  { %2243 = vmatmul.mubr.msk.f32.gmra.mrb[24].mxu1 %vm351_vm1, %v2812_v55  ;;  %2261 = vmatmul.mubr.msk.f32.gmra.mrb[40].mxu0 %vm351_vm1, %v2812_v55 }
 0x19f   :  { %570 = vmatprep.mubr.f32.mxu1 %v2590_v24  ;;  %731 = vmatprep.mubr.f32.mxu0 %v2590_v24 }
 0x1a2   :  { %2244 = vmatmul.mubr.msk.f32.gmra.mrb[26].mxu1 %vm351_vm1, %v2810_v54  ;;  %2262 = vmatmul.mubr.msk.f32.gmra.mrb[42].mxu0 %vm351_vm1, %v2810_v54 }
 0x1a3   :  { %576 = vmatprep.mubr.f32.mxu1 %v2590_v24  ;;  %975 = vmatprep.mubr.f32.mxu0 %v2590_v24 }
 0x1a6   :  { %2245 = vmatmul.mubr.msk.f32.gmra.mrb[28].mxu1 %vm351_vm1, %v2822_v57  ;;  %2285 = vmatmul.mubr.msk.f32.vlgmr.msra.gmra.mrb[44].mxu0 %vm351_vm1, %v2745_v31 }
 0x1a7   :  { %582 = vmatprep.mubr.f32.mxu1 %v2590_v24  ;;  %981 = vmatprep.mubr.f32.mxu0 %v2590_v24 }
 0x1aa   :  { %2246 = vmatmul.mubr.msk.f32.gmra.mrb[30].mxu1 %vm351_vm1, %v2820_v56  ;;  %2286 = vmatmul.mubr.msk.f32.gmra.mrb[46].mxu0 %vm351_vm1, %v2743_v30 }
 0x1ab   :  { %737 = vmatprep.mubr.f32.mxu1 %v2590_v24  ;;  %987 = vmatprep.mubr.f32.mxu0 %v2590_v24 }
 0x1ae   :  { %2263 = vmatmul.mubr.msk.f32.vlgmr.msra.gmra.mrb[32].mxu1 %vm351_vm1, %v2822_v57  ;;  %2287 = vmatmul.mubr.msk.f32.gmra.mrb[48].mxu0 %vm351_vm1, %v2757_v39 }
 0x1af   :  { %2518 = vmatpush1.bf16.msra.mxu1 %v2517_v62  ;;  %743 = vmatprep.mubr.f32.mxu1 %v2590_v24 }
 0x1b0   :  { %2520 = vmatprep.subr.bf16.mxu1 %v2519_v63  ;;  %993 = vmatprep.mubr.f32.mxu0 %v2590_v24 }
 0x1b2   :  { %2264 = vmatmul.mubr.msk.f32.gmra.mrb[34].mxu1 %vm351_vm1, %v2820_v56  ;;  %2288 = vmatmul.mubr.msk.f32.gmra.mrb[50].mxu0 %vm351_vm1, %v2753_v37 }
 0x1b3   :  { %2522 = vmatpush1.bf16.msra.mxu1 %v2521_v2  ;;  %999 = vmatprep.mubr.f32.mxu0 %v2590_v24 }
 0x1b4   :  { %2265 = vmatprep.subr.msk.mxu1 %vm400_vm0, %v347_v3  ;;  %814 = vmatprep.mubr.f32.mxu1 %v2590_v24 }
 0x1b6   :  { %2289 = vmatmul.mubr.msk.f32.gmra.mrb[52].mxu0 %vm351_vm1, %v2768_v44 }
 0x1b7   :  { %2266 = vmatpush1.msk.msra.mxu1 %vm400_vm0, %v346_v8  ;;  %1005 = vmatprep.mubr.f32.mxu0 %v2590_v24 }
 0x1b8   :  { %2267 = vmatmul.mubr.msk.f32.vlgmr.msra.gmra.mrb[36].mxu1 %vm351_vm1, %v2745_v31  ;;  %2532 = vmatprep.subr.bf16.mxu1 %v2531_v9 }
 0x1b9   :  { %2534 = vmatpush3.bf16.msra.mxu1 %v2531_v9  ;;  %820 = vmatprep.mubr.f32.mxu1 %v2590_v24 }
 0x1ba   :  { %2290 = vmatmul.mubr.msk.f32.gmra.mrb[54].mxu0 %vm351_vm1, %v2765_v43  ;;  %2536 = vmatprep.subr.bf16.mxu1 %v2535_v10 }
 0x1bb   :  { %1011 = vmatprep.mubr.f32.mxu0 %v2590_v24 }
 0x1bc   :  { %2268 = vmatmul.mubr.msk.f32.gmra.mrb[38].mxu1 %vm351_vm1, %v2743_v30 }
 0x1bd   :  { %826 = vmatprep.mubr.f32.mxu1 %v2590_v24  ;;  %2538 = vmatpush3.bf16.msra.mxu1 %v2535_v10 }
 0x1be   :  { %2291 = vmatmul.mubr.msk.f32.gmra.mrb[56].mxu0 %vm351_vm1, %v2781_v49  ;;  %2441 = vmatprep.subr.msk.mxu1 %vm400_vm0, %v350_v11 }
 0x1bf   :  { %1017 = vmatprep.mubr.f32.mxu0 %v2590_v24 }
 0x1c0   :  { %2269 = vmatmul.mubr.msk.f32.gmra.mrb[40].mxu1 %vm351_vm1, %v2757_v39 }
 0x1c1   :  { %832 = vmatprep.mubr.f32.mxu1 %v2590_v24  ;;  %2442 = vmatpush3.msk.msra.mxu1 %vm400_vm0, %v350_v11 }
 0x1c2   :  { %2292 = vmatmul.mubr.msk.f32.gmra.mrb[58].mxu0 %vm351_vm1, %v2777_v48 }
 0x1c3   :  { %1023 = vmatprep.mubr.f32.mxu0 %v2590_v24 }
 0x1c4   :  { %2270 = vmatmul.mubr.msk.f32.gmra.mrb[42].mxu1 %vm351_vm1, %v2753_v37 }
 0x1c5   :  { %838 = vmatprep.mubr.f32.mxu1 %v2590_v24 }
 0x1c6   :  { %2293 = vmatmul.mubr.msk.f32.gmra.mrb[60].mxu0 %vm351_vm1, %v2792_v51 }
 0x1c7   :  { %1029 = vmatprep.mubr.f32.mxu0 %v2590_v24 }
 0x1c8   :  { %2271 = vmatmul.mubr.msk.f32.gmra.mrb[44].mxu1 %vm351_vm1, %v2768_v44 }
 0x1c9   :  { %844 = vmatprep.mubr.f32.mxu1 %v2590_v24 }
 0x1ca   :  { %2294 = vmatmul.mubr.msk.f32.gmra.mrb[62].mxu0 %vm351_vm1, %v2790_v50 }
 0x1cb   :  { %1035 = vmatprep.mubr.f32.mxu0 %v2590_v24 }
 0x1cc   :  { %2272 = vmatmul.mubr.msk.f32.gmra.mrb[46].mxu1 %vm351_vm1, %v2765_v43 }
 0x1cd   :  { %850 = vmatprep.mubr.f32.mxu1 %v2590_v24 }
 0x1ce   :  { %2295 = vmatmul.mubr.msk.f32.gmra.mrb[64].mxu0 %vm351_vm1, %v2802_v53 }
 0x1cf   :  { %1041 = vmatprep.mubr.f32.mxu0 %v2590_v24 }
 0x1d0   :  { %2273 = vmatmul.mubr.msk.f32.gmra.mrb[48].mxu1 %vm351_vm1, %v2781_v49 }
 0x1d1   :  { %856 = vmatprep.mubr.f32.mxu1 %v2590_v24 }
 0x1d2   :  { %2296 = vmatmul.mubr.msk.f32.gmra.mrb[66].mxu0 %vm351_vm1, %v2800_v52 }
 0x1d3   :  { %1047 = vmatprep.mubr.f32.mxu0 %v2590_v24 }
 0x1d4   :  { %2274 = vmatmul.mubr.msk.f32.gmra.mrb[50].mxu1 %vm351_vm1, %v2777_v48 }
 0x1d5   :  { %862 = vmatprep.mubr.f32.mxu1 %v2590_v24 }
 0x1d6   :  { %2297 = vmatmul.mubr.msk.f32.gmra.mrb[68].mxu0 %vm351_vm1, %v2812_v55 }
 0x1d7   :  { %1053 = vmatprep.mubr.f32.mxu0 %v2590_v24 }
 0x1d8   :  { %2275 = vmatmul.mubr.msk.f32.gmra.mrb[52].mxu1 %vm351_vm1, %v2792_v51 }
 0x1d9   :  { %868 = vmatprep.mubr.f32.mxu1 %v2590_v24 }
 0x1da   :  { %2298 = vmatmul.mubr.msk.f32.gmra.mrb[70].mxu0 %vm351_vm1, %v2810_v54 }
 0x1db   :  { %1059 = vmatprep.mubr.f32.mxu0 %v2590_v24 }
 0x1dc   :  { %2276 = vmatmul.mubr.msk.f32.gmra.mrb[54].mxu1 %vm351_vm1, %v2790_v50 }
 0x1dd   :  { %874 = vmatprep.mubr.f32.mxu1 %v2590_v24 }
 0x1de   :  { %2299 = vmatmul.mubr.msk.f32.gmra.mrb[72].mxu0 %vm351_vm1, %v2822_v57 }
 0x1df   :  { %1065 = vmatprep.mubr.f32.mxu0 %v2590_v24 }
 0x1e0   :  { %2277 = vmatmul.mubr.msk.f32.gmra.mrb[56].mxu1 %vm351_vm1, %v2802_v53 }
 0x1e1   :  { %880 = vmatprep.mubr.f32.mxu1 %v2590_v24 }
 0x1e2   :  { %2300 = vmatmul.mubr.msk.f32.gmra.mrb[74].mxu0 %vm351_vm1, %v2820_v56 }
 0x1e4   :  { %2278 = vmatmul.mubr.msk.f32.gmra.mrb[58].mxu1 %vm351_vm1, %v2800_v52 }
 0x1e5   :  { %886 = vmatprep.mubr.f32.mxu1 %v2590_v24 }
 0x1e8   :  { %2279 = vmatmul.mubr.msk.f32.gmra.mrb[60].mxu1 %vm351_vm1, %v2812_v55 }
 0x1e9   :  { %892 = vmatprep.mubr.f32.mxu1 %v2590_v24 }
 0x1ec   :  { %2280 = vmatmul.mubr.msk.f32.gmra.mrb[62].mxu1 %vm351_vm1, %v2810_v54 }
 0x1ed   :  { %898 = vmatprep.mubr.f32.mxu1 %v2590_v24 }
 0x1f0   :  { %2281 = vmatmul.mubr.msk.f32.gmra.mrb[64].mxu1 %vm351_vm1, %v2822_v57 }
 0x1f1   :  { %904 = vmatprep.mubr.f32.mxu1 %v2590_v24 }
 0x1f4   :  { %2282 = vmatmul.mubr.msk.f32.gmra.mrb[66].mxu1 %vm351_vm1, %v2820_v56 }
 0x1f5   :  { %2443 = vmatprep.mubr.msk.f32.mxu1 %vm351_vm1, %v2745_v31 }
 0x1f8   :  { %2444 = vmatmul.mubr.msk.f32.vlgmr.msra.gmra.mrb[68].mxu1 %vm351_vm1, %v2743_v30 }
 0x1f9   :  { %2446 = vmatprep.mubr.msk.f32.mxu1 %vm351_vm1, %v2757_v39 }
 0x1fc   :  { %2447 = vmatmul.mubr.msk.f32.gmra.mrb[70].mxu1 %vm351_vm1, %v2753_v37 }
 0x1fd   :  { %2449 = vmatprep.mubr.msk.f32.mxu1 %vm351_vm1, %v2768_v44 }
 0x200   :  { %2450 = vmatmul.mubr.msk.f32.gmra.mrb[72].mxu1 %vm351_vm1, %v2765_v43 }
 0x201   :  { %2452 = vmatprep.mubr.msk.f32.mxu1 %vm351_vm1, %v2781_v49 }
 0x204   :  { %2453 = vmatmul.mubr.msk.f32.gmra.mrb[74].mxu1 %vm351_vm1, %v2777_v48 }
 0x205   :  { %2455 = vmatprep.mubr.msk.f32.mxu1 %vm351_vm1, %v2792_v51 }
 0x208   :  { %2456 = vmatmul.mubr.msk.f32.gmra.mrb[76].mxu1 %vm351_vm1, %v2790_v50 }
 0x209   :  { %2458 = vmatprep.mubr.msk.f32.mxu1 %vm351_vm1, %v2802_v53 }
 0x20c   :  { %2459 = vmatmul.mubr.msk.f32.gmra.mrb[78].mxu1 %vm351_vm1, %v2800_v52 }
 0x20d   :  { %2461 = vmatprep.mubr.msk.f32.mxu1 %vm351_vm1, %v2812_v55 }
 0x210   :  { %2462 = vmatmul.mubr.msk.f32.gmra.mrb[80].mxu1 %vm351_vm1, %v2810_v54 }
 0x211   :  { %2464 = vmatprep.mubr.msk.f32.mxu1 %vm351_vm1, %v2822_v57 }
 0x214   :  { %2465 = vmatmul.mubr.msk.f32.gmra.mrb[82].mxu1 %vm351_vm1, %v2820_v56 }
 0x241   :  { %v494_v12 = vpop.f32.mrb[0].mxu1  ;;  %v655_v13 = vpop.f32.mrb[16].mxu0 }
 0x242   :  { %v496_v14 = vpop.f32.mrb[1].mxu1  ;;  %v657_v15 = vpop.f32.mrb[17].mxu0 }
 0x243   :  { %v1233_v16 = vrot.slane %v496_v14, 1  ;;  %v1463_v17 = vrot.slane %v657_v15, 1 }
 0x245   :  { %v1265_v18 = vadd.f32 %v1233_v16, %v494_v12  ;;  %v3008_v19 = vadd.f32 %v1463_v17, %v655_v13  ;;  %v500_v20 = vpop.f32.mrb[2].mxu1  ;;  %v661_v21 = vpop.f32.mrb[18].mxu0 }
 0x246   :  { %v502_v22 = vpop.f32.mrb[3].mxu1  ;;  %v663_v23 = vpop.f32.mrb[19].mxu0 }
 0x247   :  { %v1234_v24 = vrot.slane %v502_v22, 1  ;;  %v1464_v25 = vrot.slane %v663_v23, 1  ;;  %v1282_v0 = vsel %vm1281_vm2, %v1265_v18, -inf }
 0x248   :  { %v1283_v7 = vrot.slane %v1282_v0, 4 }
 0x249   :  { %v1266_v26 = vadd.f32 %v1234_v24, %v500_v20  ;;  %v3010_v27 = vadd.f32 %v1464_v25, %v661_v21  ;;  %v506_v28 = vpop.f32.mrb[4].mxu1  ;;  %v667_v29 = vpop.f32.mrb[20].mxu0 }
 0x24a   :  { %v508_v30 = vpop.f32.mrb[5].mxu1  ;;  %v669_v31 = vpop.f32.mrb[21].mxu0  ;;  %v1284_v17 = vmax.f32 %v1282_v0, %v1283_v7 }
 0x24b   :  { %v1235_v32 = vrot.slane %v508_v30, 1  ;;  %v1465_v33 = vrot.slane %v669_v31, 1  ;;  %v1289_v12 = vsel %vm1281_vm2, %v1266_v26, -inf }
 0x24c   :  { %v1290_v23 = vrot.slane %v1289_v12, 4  ;;  %v1285_v30 = vrot.slane %v1284_v17, 2 }
 0x24d   :  { %v1267_v34 = vadd.f32 %v1235_v32, %v506_v28  ;;  %v3012_v35 = vadd.f32 %v1465_v33, %v667_v29  ;;  %v512_v36 = vpop.f32.mrb[6].mxu1  ;;  %v673_v37 = vpop.f32.mrb[22].mxu0 }
 0x24e   :  { %v514_v38 = vpop.f32.mrb[7].mxu1  ;;  %v675_v39 = vpop.f32.mrb[23].mxu0 }
 0x24f   :  { %v1236_v40 = vrot.slane %v514_v38, 1  ;;  %v1466_v41 = vrot.slane %v675_v39, 1  ;;  %v1296_v26 = vsel %vm1281_vm2, %v1267_v34, -inf }
 0x251   :  { %v1268_v42 = vadd.f32 %v1236_v40, %v512_v36  ;;  %v3014_v43 = vadd.f32 %v1466_v41, %v673_v37  ;;  %v518_v44 = vpop.f32.mrb[8].mxu1  ;;  %v679_v45 = vpop.f32.mrb[24].mxu0  ;;  %v1291_v37 = vmax.f32 %v1289_v12, %v1290_v23 }
 0x252   :  { %v520_v46 = vpop.f32.mrb[9].mxu1  ;;  %v681_v47 = vpop.f32.mrb[25].mxu0 }
 0x253   :  { %v1237_v48 = vrot.slane %v520_v46, 1  ;;  %v1467_v49 = vrot.slane %v681_v47, 1  ;;  %v1303_v38 = vsel %vm1281_vm2, %v1268_v42, -inf  ;;  %v1297_v46 = vrot.slane %v1296_v26, 4 }
 0x255   :  { %v1269_v50 = vadd.f32 %v1237_v48, %v518_v44  ;;  %v3016_v51 = vadd.f32 %v1467_v49, %v679_v45  ;;  %v524_v52 = vpop.f32.mrb[10].mxu1  ;;  %v685_v53 = vpop.f32.mrb[26].mxu0  ;;  %v1286_v45 = vmax.f32 %v1284_v17, %v1285_v30 }
 0x256   :  { %v526_v54 = vpop.f32.mrb[11].mxu1  ;;  %v687_v55 = vpop.f32.mrb[27].mxu0 }
 0x257   :  { %v1238_v56 = vrot.slane %v526_v54, 1  ;;  %v1468_v57 = vrot.slane %v687_v55, 1  ;;  %v1310_v49 = vsel %vm1281_vm2, %v1269_v50, -inf  ;;  %v1292_v54 = vrot.slane %v1291_v37, 2 }
 0x258   :  { %v1304_v55 = vrot.slane %v1303_v38, 4  ;;  %v1311_v0 = vrot.slane %v1310_v49, 4 }
 0x259   :  { %v1270_v58 = vadd.f32 %v1238_v56, %v524_v52  ;;  %v3018_v59 = vadd.f32 %v1468_v57, %v685_v53  ;;  %v530_v60 = vpop.f32.mrb[12].mxu1  ;;  %v691_v61 = vpop.f32.mrb[28].mxu0 }
 0x25a   :  { %v532_v62 = vpop.f32.mrb[13].mxu1  ;;  %v693_v63 = vpop.f32.mrb[29].mxu0  ;;  %v1305_v7 = vmax.f32 %v1303_v38, %v1304_v55  ;;  %v1312_v17 = vmax.f32 %v1310_v49, %v1311_v0 }
 0x25b   :  { %v1239_v1 = vrot.slane %v532_v62, 1  ;;  %v1469_v2 = vrot.slane %v693_v63, 1  ;;  %v1317_v52 = vsel %vm1281_vm2, %v1270_v58, -inf  ;;  %v1298_v63 = vmax.f32 %v1296_v26, %v1297_v46 }
 0x25d   :  { %v1271_v3 = vadd.f32 %v1239_v1, %v530_v60  ;;  %v3021_v4 = vadd.f32 %v1469_v2, %v691_v61  ;;  %v536_v5 = vpop.f32.mrb[14].mxu1  ;;  %v697_v6 = vpop.f32.mrb[30].mxu0  ;;  %v1318_v1 = vrot.slane %v1317_v52, 4 }
 0x25e   :  { %v538_v8 = vpop.f32.mrb[15].mxu1  ;;  %v699_v9 = vpop.f32.mrb[31].mxu0 }
 0x25f   :  { %v1240_v10 = vrot.slane %v538_v8, 1  ;;  %v1470_v11 = vrot.slane %v699_v9, 1  ;;  %v1324_v56 = vsel %vm1281_vm2, %v1271_v3, -inf }
 0x260   :  { %v1325_v8 = vrot.slane %v1324_v56, 4 }
 0x261   :  { %v1272_v13 = vadd.f32 %v1240_v10, %v536_v5  ;;  %v3024_v14 = vadd.f32 %v1470_v11, %v697_v6  ;;  %v542_v15 = vpop.f32.mrb[16].mxu1  ;;  %v703_v16 = vpop.f32.mrb[32].mxu0  ;;  %v1287_v5 = vrot.slane %v1286_v45, 1  ;;  %v1293_v10 = vmax.f32 %v1291_v37, %v1292_v54 }
 0x262   :  { %v544_v18 = vpop.f32.mrb[17].mxu1  ;;  %v705_v20 = vpop.f32.mrb[33].mxu0 }
 0x263   :  { %v1241_v21 = vrot.slane %v544_v18, 1  ;;  %v1471_v22 = vrot.slane %v705_v20, 1  ;;  %v1331_v42 = vsel %vm1281_vm2, %v1272_v13, -inf  ;;  %v1319_v18 = vmax.f32 %v1317_v52, %v1318_v1 }
 0x264   :  { %v1332_v9 = vrot.slane %v1331_v42, 4  ;;  %v1288_v23 = vmax.f32 %v1286_v45, %v1287_v5 }
 0x265   :  { %v1273_v24 = vadd.f32 %v1241_v21, %v542_v15  ;;  %v3026_v25 = vadd.f32 %v1471_v22, %v703_v16  ;;  %v548_v28 = vpop.f32.mrb[18].mxu1  ;;  %v709_v29 = vpop.f32.mrb[34].mxu0  ;;  %v1299_v16 = vrot.slane %v1298_v63, 2  ;;  %v1320_v45 = vrot.slane %v1319_v18, 2 }
 0x266   :  { %v550_v31 = vpop.f32.mrb[19].mxu1  ;;  %v711_v32 = vpop.f32.mrb[35].mxu0 }
 0x267   :  { %v1242_v33 = vrot.slane %v550_v31, 1  ;;  %v1472_v36 = vrot.slane %v711_v32, 1  ;;  %v1338_v3 = vsel %vm1281_vm2, %v1273_v24, -inf  ;;  %v1306_v31 = vrot.slane %v1305_v7, 2 }
 0x268   :  { %v1326_v32 = vmax.f32 %v1324_v56, %v1325_v8  ;;  %v1333_v24 = vmax.f32 %v1331_v42, %v1332_v9  ;;  %v1300_v46 = vmax.f32 %v1298_v63, %v1299_v16 }
 0x269   :  { %v1274_v39 = vadd.f32 %v1242_v33, %v548_v28  ;;  %v3030_v40 = vadd.f32 %v1472_v36, %v709_v29  ;;  %v554_v41 = vpop.f32.mrb[20].mxu1  ;;  %v715_v44 = vpop.f32.mrb[36].mxu0  ;;  %v1339_v28 = vrot.slane %v1338_v3, 4  ;;  %v1307_v55 = vmax.f32 %v1305_v7, %v1306_v31 }
 0x26a   :  { %v556_v47 = vpop.f32.mrb[21].mxu1  ;;  %v717_v48 = vpop.f32.mrb[37].mxu0  ;;  %v1327_v56 = vrot.slane %v1326_v32, 2  ;;  %v1334_v42 = vrot.slane %v1333_v24, 2  ;;  %v1301_v16 = vrot.slane %v1300_v46, 1 }
 0x26b   :  { %v1243_v53 = vrot.slane %v556_v47, 1  ;;  %v1473_v34 = vrot.slane %v717_v48, 1  ;;  %v1345_v20 = vsel %vm1281_vm2, %v1274_v39, -inf  ;;  %v1294_v39 = vrot.slane %v1293_v10, 1 }
 0x26c   :  { %v1346_v33 = vrot.slane %v1345_v20, 4  ;;  %v1313_v47 = vrot.slane %v1312_v17, 2  ;;  %v1340_v52 = vmax.f32 %v1338_v3, %v1339_v28 }
 0x26d   :  { %v1275_v57 = vadd.f32 %v1243_v53, %v554_v41  ;;  %v3036_v60 = vadd.f32 %v1473_v34, %v715_v44  ;;  %v560_v61 = vpop.f32.mrb[22].mxu1  ;;  %v721_v62 = vpop.f32.mrb[38].mxu0  ;;  %v1295_v5 = vmax.f32 %v1293_v10, %v1294_v39  ;;  %v1308_v10 = vrot.slane %v1307_v55, 1 }
 0x26e   :  { %v562_v2 = vpop.f32.mrb[23].mxu1  ;;  %v723_v50 = vpop.f32.mrb[39].mxu0  ;;  %v1341_v7 = vrot.slane %v1340_v52, 2 }
 0x26f   :  { %v1244_v58 = vrot.slane %v562_v2, 1  ;;  %v1474_v6 = vrot.slane %v723_v50, 1  ;;  %v1352_v26 = vsel %vm1281_vm2, %v1275_v57, -inf  ;;  %v1394_v50 = vmax.f32 %v1288_v23, 0.0 }
 0x270   :  { %v1353_v53 = vrot.slane %v1352_v26, 4 }
 0x271   :  { %v1276_v11 = vadd.f32 %v1244_v58, %v560_v61  ;;  %v3039_v12 = vadd.f32 %v1474_v6, %v721_v62  ;;  %v566_v13 = vpop.f32.mrb[24].mxu1  ;;  %v727_v15 = vpop.f32.mrb[40].mxu0  ;;  %v1347_v61 = vmax.f32 %v1345_v20, %v1346_v33  ;;  %v1314_v58 = vmax.f32 %v1312_v17, %v1313_v47 }
 0x272   :  { %v568_v21 = vpop.f32.mrb[25].mxu1  ;;  %v729_v22 = vpop.f32.mrb[41].mxu0  ;;  %v1321_v6 = vmax.f32 %v1319_v18, %v1320_v45  ;;  %v1354_v3 = vmax.f32 %v1352_v26, %v1353_v53  ;;  %v1328_v20 = vmax.f32 %v1326_v32, %v1327_v56  ;;  %v1335_v17 = vmax.f32 %v1333_v24, %v1334_v42 }
 0x273   :  { %v1245_v29 = vrot.slane %v568_v21, 1  ;;  %v1475_v30 = vrot.slane %v729_v22, 1  ;;  %v1359_v36 = vsel %vm1281_vm2, %v1276_v11, -inf  ;;  %v1348_v18 = vrot.slane %v1347_v61, 2 }
 0x274   :  { %v1360_v57 = vrot.slane %v1359_v36, 4  ;;  %v1315_v31 = vrot.slane %v1314_v58, 1  ;;  %v1322_v26 = vrot.slane %v1321_v6, 1  ;;  %v1342_v32 = vmax.f32 %v1340_v52, %v1341_v7 }
 0x275   :  { %v1277_v37 = vadd.f32 %v1245_v29, %v566_v13  ;;  %v3044_v38 = vadd.f32 %v1475_v30, %v727_v15  ;;  %v572_v41 = vpop.f32.mrb[26].mxu1  ;;  %v733_v44 = vpop.f32.mrb[42].mxu0  ;;  %v3057_v15 = vld [vmem:[%s3494_s3] ss:$0 sm:$0xff]  ;;  %v1395_v30 = vmax.f32 %v1295_v5, 0.0  ;;  %v1302_v47 = vmax.f32 %v1300_v46, %v1301_v16 }
 0x276   :  { %v574_v48 = vpop.f32.mrb[27].mxu1  ;;  %v735_v49 = vpop.f32.mrb[43].mxu0  ;;  %v1361_v21 = vmax.f32 %v1359_v36, %v1360_v57  ;;  %v1355_v36 = vrot.slane %v1354_v3, 2  ;;  %v1329_v24 = vrot.slane %v1328_v20, 1  ;;  %v1336_v53 = vrot.slane %v1335_v17, 1 }
 0x277   :  { %v1246_v34 = vrot.slane %v574_v48, 1  ;;  %v1476_v54 = vrot.slane %v735_v49, 1  ;;  %v1366_v62 = vsel %vm1281_vm2, %v1277_v37, -inf  ;;  %v1309_v49 = vmax.f32 %v1307_v55, %v1308_v10 }
 0x278   :  { %v1367_v22 = vrot.slane %v1366_v62, 4  ;;  %v1362_v45 = vrot.slane %v1361_v21, 2  ;;  %v3069_v57 = vmul.f32 %v3057_v15, %v1395_v30  ;;  %v1343_v46 = vrot.slane %v1342_v32, 1 }
 0x279   :  { %v1278_v0 = vadd.f32 %v1246_v34, %v572_v41  ;;  %v3047_v1 = vadd.f32 %v1476_v54, %v733_v44  ;;  %v578_v2 = vpop.f32.mrb[28].mxu1  ;;  %v3049_v63 = vpop.f32.mrb[44].mxu0  ;;  %v3064_v44 = vmul.f32 %v3057_v15, %v1394_v50  ;;  %v1349_v34 = vmax.f32 %v1347_v61, %v1348_v18 }
 0x27a   :  { %v580_v8 = vpop.f32.mrb[29].mxu1  ;;  %v3051_v9 = vpop.f32.mrb[45].mxu0  ;;  %v1368_v48 = vmax.f32 %v1366_v62, %v1367_v22  ;;  %v1396_v7 = vmax.f32 %v1302_v47, 0.0  ;;  %v1330_v61 = vmax.f32 %v1328_v20, %v1329_v24  ;;  %v1397_v22 = vmax.f32 %v1309_v49, 0.0 }
 0x27b   :  { %v1373_v11 = vsel %vm1281_vm2, %v1278_v0, -inf  ;;  %v1247_v13 = vrot.slane %v580_v8, 1  ;;  %v1316_v0 = vmax.f32 %v1314_v58, %v1315_v31  ;;  %v1356_v8 = vmax.f32 %v1354_v3, %v1355_v36 }
 0x27c   :  { %v1374_v33 = vrot.slane %v1373_v11, 4  ;;  %v1369_v16 = vrot.slane %v1368_v48, 2  ;;  %v1337_v10 = vmax.f32 %v1335_v17, %v1336_v53  ;;  %v1350_v18 = vrot.slane %v1349_v34, 1 }
 0x27d   :  { %v1279_v23 = vadd.f32 %v1247_v13, %v578_v2  ;;  %v584_v28 = vpop.f32.mrb[30].mxu1  ;;  %v3059_v29 = vpop.f32.mrb[46].mxu0  ;;  %v1323_v2 = vmax.f32 %v1321_v6, %v1322_v26  ;;  %v1363_v13 = vmax.f32 %v1361_v21, %v1362_v45  ;;  %v1357_v20 = vrot.slane %v1356_v8, 1 }
 0x27e   :  { %v586_v37 = vpop.f32.mrb[31].mxu1  ;;  %v3061_v41 = vpop.f32.mrb[47].mxu0  ;;  %v1375_v50 = vmax.f32 %v1373_v11, %v1374_v33  ;;  %v1398_v11 = vmax.f32 %v1316_v0, 0.0  ;;  %v1344_v33 = vmax.f32 %v1342_v32, %v1343_v46  ;;  %v3082_v17 = vmul.f32 %v3057_v15, %v1396_v7 }
 0x27f   :  { %v1248_v39 = vrot.slane %v586_v37, 1  ;;  %v1380_v62 = vsel %vm1281_vm2, %v1279_v23, -inf  ;;  %v1399_v30 = vmax.f32 %v1323_v2, 0.0  ;;  %v1400_v36 = vmax.f32 %v1330_v61, 0.0 }
 0x280   :  { %v1376_v31 = vrot.slane %v1375_v50, 2  ;;  %v1381_v3 = vrot.slane %v1380_v62, 4  ;;  %v1370_v47 = vmax.f32 %v1368_v48, %v1369_v16  ;;  %v3085_v24 = vmul.f32 %v3057_v15, %v1397_v22 }
 0x281   :  { %v1280_v54 = vadd.f32 %v1248_v39, %v584_v28  ;;  %v739_v56 = vpop.f32.mrb[32].mxu1  ;;  %v3066_v42 = vpop.f32.mrb[48].mxu0  ;;  %v1364_v39 = vrot.slane %v1363_v13, 1  ;;  %v1401_v45 = vmax.f32 %v1337_v10, 0.0  ;;  %v1351_v49 = vmax.f32 %v1349_v34, %v1350_v18 }
 0x282   :  { %v741_v52 = vpop.f32.mrb[33].mxu1  ;;  %v3071_v5 = vpop.f32.mrb[49].mxu0  ;;  %v3092_v32 = vmul.f32 %v3057_v15, %v1398_v11  ;;  %v1382_v0 = vmax.f32 %v1380_v62, %v1381_v3  ;;  %v3097_v46 = vmul.f32 %v3057_v15, %v1399_v30  ;;  %v1402_v48 = vmax.f32 %v1344_v33, 0.0 }
 0x283   :  { %v1477_v55 = vrot.slane %v741_v52, 1  ;;  %v1387_v21 = vsel %vm1281_vm2, %v1280_v54, -inf  ;;  %v1377_v54 = vmax.f32 %v1375_v50, %v1376_v31  ;;  %v1757_v7 = vrot.slane %v3049_v63, 1 }
 0x284   :  { %v1388_v2 = vrot.slane %v1387_v21, 4  ;;  %v3101_v61 = vmul.f32 %v3057_v15, %v1400_v36  ;;  %v1365_v16 = vmax.f32 %v1363_v13, %v1364_v39  ;;  %v1371_v22 = vrot.slane %v1370_v47, 1 }
 0x285   :  { %v3074_v28 = vadd.f32 %v1477_v55, %v739_v56  ;;  %v745_v58 = vpop.f32.mrb[34].mxu1  ;;  %v3076_v6 = vpop.f32.mrb[50].mxu0  ;;  %v1358_v55 = vmax.f32 %v1356_v8, %v1357_v20  ;;  %v1403_v50 = vmax.f32 %v1351_v49, 0.0  ;;  %v1821_v62 = vrot.slane %v3051_v9, 2 }
 0x286   :  { %v747_v26 = vpop.f32.mrb[35].mxu1  ;;  %v3078_v23 = vpop.f32.mrb[51].mxu0  ;;  %v3107_v30 = vmul.f32 %v3057_v15, %v1401_v45  ;;  %v1378_v8 = vrot.slane %v1377_v54, 1  ;;  %v1383_v31 = vrot.slane %v1382_v0, 2  ;;  %v1389_v63 = vmax.f32 %v1387_v21, %v1388_v2 }
 0x287   :  { %v1478_v37 = vrot.slane %v747_v26, 1  ;;  %v3113_v13 = vmul.f32 %v3057_v15, %v1402_v48  ;;  %v1404_v33 = vmax.f32 %v1358_v55, 0.0  ;;  %v1758_v20 = vrot.slane %v3059_v29, 1 }
 0x288   :  { %v1405_v36 = vmax.f32 %v1365_v16, 0.0  ;;  %v1372_v39 = vmax.f32 %v1370_v47, %v1371_v22  ;;  %v3120_v21 = vmul.f32 %v3057_v15, %v1403_v50  ;;  %v1379_v55 = vmax.f32 %v1377_v54, %v1378_v8 }
 0x289   :  { %v3087_v53 = vadd.f32 %v1478_v37, %v745_v58  ;;  %v3089_v56 = vpop.f32.mrb[52].mxu0  ;;  %v1384_v29 = vmax.f32 %v1382_v0, %v1383_v31  ;;  %v3129_v47 = vmul.f32 %v3057_v15, %v1404_v33  ;;  %v1759_v22 = vrot.slane %v3066_v42, 1 }
 0x28a   :  { %v3094_v52 = vpop.f32.mrb[53].mxu0  ;;  %v1407_v42 = vmax.f32 %v1379_v55, 0.0 }
 0x28b   :  { %v816_v34 = vpop.f32.mrb[36].mxu1 }
 0x28c   :  { %v1527_v10 = vrot.slane %v816_v34, 2  ;;  %v818_v18 = vpop.f32.mrb[37].mxu1 }
 0x28d   :  { %v1789_v58 = vadd.f32 %v1757_v7, %v818_v18  ;;  %v3104_v11 = vpop.f32.mrb[54].mxu0 }
 0x28e   :  { %v1559_v3 = vadd.f32 %v1527_v10, %v3008_v19  ;;  %v3110_v26 = vpop.f32.mrb[55].mxu0  ;;  %v1822_v19 = vrot.slane %v3061_v41, 2  ;;  %v1390_v10 = vrot.slane %v1389_v63, 2 }
 0x28f   :  { %v3116_v9 = vadd.f32 %v1821_v62, %v1789_v58  ;;  %v822_v37 = vpop.f32.mrb[38].mxu1  ;;  %v3135_v58 = vmul.f32 %v3057_v15, %v1405_v36  ;;  %v1760_v36 = vrot.slane %v3076_v6, 1  ;;  %v3155_v6 = vmul.f32 %v3057_v15, %v1407_v42 }
 0x290   :  { %v1576_v45 = vsel %vm1575_vm3, %v1559_v3, -inf  ;;  %v1528_v49 = vrot.slane %v822_v37, 2  ;;  %v824_v7 = vpop.f32.mrb[39].mxu1  ;;  %v1406_v3 = vmax.f32 %v1372_v39, 0.0  ;;  %v1761_v42 = vrot.slane %v3089_v56, 1 }
 0x291   :  { %3496 = vst [vmem:[#allocation5_spill] sm:$0xff] %v3116_v9  ;;  %v1577_v2 = vrot.slane %v1576_v45, 4  ;;  %v1790_v48 = vadd.f32 %v1758_v20, %v824_v7  ;;  %v3123_v34 = vpop.f32.mrb[56].mxu0  ;;  %3498 = vst [vmem:[#allocation7_spill] sm:$0xff] %v3155_v6 }
 0x292   :  { %v1560_v18 = vadd.f32 %v1528_v49, %v3010_v27  ;;  %v3126_v16 = vpop.f32.mrb[57].mxu0  ;;  %v1823_v27 = vrot.slane %v3071_v5, 2  ;;  %v1391_v49 = vmax.f32 %v1389_v63, %v1390_v10  ;;  %v3148_v5 = vmul.f32 %v3057_v15, %v1406_v3 }
 0x293   :  { %v1578_v50 = vmax.f32 %v1576_v45, %v1577_v2  ;;  %v3132_v62 = vadd.f32 %v1822_v19, %v1790_v48  ;;  %v828_v41 = vpop.f32.mrb[40].mxu1  ;;  %v1385_v45 = vrot.slane %v1384_v29, 1 }
 0x294   :  { %v1583_v54 = vsel %vm1575_vm3, %v1560_v18, -inf  ;;  %v1529_v0 = vrot.slane %v828_v41, 2  ;;  %v830_v8 = vpop.f32.mrb[41].mxu1 }
 0x295   :  { %v1579_v31 = vrot.slane %v1578_v50, 2  ;;  %v1584_v20 = vrot.slane %v1583_v54, 4  ;;  %v1791_v33 = vadd.f32 %v1759_v22, %v830_v8  ;;  %v3139_v37 = vpop.f32.mrb[58].mxu0  ;;  %v1824_v22 = vrot.slane %v3078_v23, 2 }
 0x296   :  { %v1561_v7 = vadd.f32 %v1529_v0, %v3012_v35  ;;  %v3142_v19 = vpop.f32.mrb[59].mxu0 }
 0x297   :  { %v1580_v39 = vmax.f32 %v1578_v50, %v1579_v31  ;;  %v1585_v2 = vmax.f32 %v1583_v54, %v1584_v20  ;;  %v3145_v48 = vadd.f32 %v1823_v27, %v1791_v33  ;;  %v834_v18 = vpop.f32.mrb[42].mxu1  ;;  %v3157_v50 = vmax.f32 %v1384_v29, %v1385_v45  ;;  %v3165_v31 = vld [vmem:[%s3494_s3 + $0x1] ss:$0 sm:$0xff] }
 0x298   :  { %v1590_v55 = vsel %vm1575_vm3, %v1561_v7, -inf  ;;  %v1530_v41 = vrot.slane %v834_v18, 2  ;;  %v836_v63 = vpop.f32.mrb[43].mxu1  ;;  %v1392_v54 = vrot.slane %v1391_v49, 1  ;;  %v1825_v29 = vrot.slane %v3094_v52, 2 }
 0x299   :  { %3497 = vst [vmem:[#allocation6_spill] sm:$0xff] %v3145_v48  ;;  %v1581_v10 = vrot.slane %v1580_v39, 1  ;;  %v1586_v35 = vrot.slane %v1585_v2, 2  ;;  %v1591_v0 = vrot.slane %v1590_v55, 4  ;;  %v1792_v8 = vadd.f32 %v1760_v36, %v836_v63  ;;  %v3152_v9 = vpop.f32.mrb[60].mxu0 }
 0x29a   :  { %v1562_v3 = vadd.f32 %v1530_v41, %v3014_v43  ;;  %v3160_v27 = vpop.f32.mrb[61].mxu0 }
 0x29b   :  { %v1582_v23 = vmax.f32 %v1580_v39, %v1581_v10  ;;  %v1587_v20 = vmax.f32 %v1585_v2, %v1586_v35  ;;  %v1592_v33 = vmax.f32 %v1590_v55, %v1591_v0  ;;  %v3167_v7 = vadd.f32 %v1824_v22, %v1792_v8  ;;  %v840_v36 = vpop.f32.mrb[44].mxu1 }
 0x29c   :  { %v1597_v45 = vsel %vm1575_vm3, %v1562_v3, -inf  ;;  %v1531_v43 = vrot.slane %v840_v36, 2  ;;  %v842_v18 = vpop.f32.mrb[45].mxu1  ;;  %v3175_v55 = vmax.f32 %v1391_v49, %v1392_v54  ;;  %v1762_v36 = vrot.slane %v3104_v11, 1 }
 0x29d   :  { %3499 = vst [vmem:[#allocation8_spill] sm:$0xff] %v3167_v7  ;;  %v1688_v41 = vmax.f32 %v1582_v23, 0.0  ;;  %v1588_v39 = vrot.slane %v1587_v20, 1  ;;  %v1593_v63 = vrot.slane %v1592_v33, 2  ;;  %v1598_v10 = vrot.slane %v1597_v45, 4  ;;  %v3172_v6 = vpop.f32.mrb[62].mxu0 }
 0x29e   :  { %v1563_v22 = vadd.f32 %v1531_v43, %v3016_v51  ;;  %v1793_v35 = vadd.f32 %v1761_v42, %v842_v18  ;;  %v3178_v56 = vpop.f32.mrb[63].mxu0 }
 0x29f   :  { %v1709_v52 = vmul.f32 %v3165_v31, %v1688_v41  ;;  %v1589_v0 = vmax.f32 %v1587_v20, %v1588_v39  ;;  %v1594_v8 = vmax.f32 %v1592_v33, %v1593_v63  ;;  %v1599_v3 = vmax.f32 %v1597_v45, %v1598_v10  ;;  %v846_v23 = vpop.f32.mrb[46].mxu1 }
 0x2a0   :  { %v1604_v48 = vsel %vm1575_vm3, %v1563_v22, -inf  ;;  %v3183_v7 = vadd.f32 %v1825_v29, %v1793_v35  ;;  %v1532_v2 = vrot.slane %v846_v23, 2  ;;  %v848_v49 = vpop.f32.mrb[47].mxu1  ;;  %v1826_v20 = vrot.slane %v3110_v26, 2 }
 0x2a1   :  { %v3186_v54 = vadd.f32 %v1709_v52, %v3064_v44  ;;  %v1689_v51 = vmax.f32 %v1589_v0, 0.0  ;;  %v1595_v42 = vrot.slane %v1594_v8, 1  ;;  %v1600_v43 = vrot.slane %v1599_v3, 2  ;;  %v3188_v18 = vpop.f32.mrb[64].mxu0 }
 0x2a2   :  { %v1605_v33 = vrot.slane %v1604_v48, 4  ;;  %v1564_v45 = vadd.f32 %v1532_v2, %v3018_v59  ;;  %v1794_v11 = vadd.f32 %v1762_v36, %v848_v49  ;;  %v3192_v41 = vpop.f32.mrb[65].mxu0  ;;  %v1763_v39 = vrot.slane %v3123_v34, 1 }
 0x2a3   :  { %v1710_v29 = vmul.f32 %v3165_v31, %v1689_v51  ;;  %v1596_v63 = vmax.f32 %v1594_v8, %v1595_v42  ;;  %v1601_v44 = vmax.f32 %v1599_v3, %v1600_v43  ;;  %v852_v10 = vpop.f32.mrb[48].mxu1  ;;  %v1827_v34 = vrot.slane %v3126_v16, 2 }
 0x2a4   :  { %v1606_v22 = vmax.f32 %v1604_v48, %v1605_v33  ;;  %v1611_v35 = vsel %vm1575_vm3, %v1564_v45, -inf  ;;  %v3197_v52 = vadd.f32 %v1826_v20, %v1794_v11  ;;  %v1533_v0 = vrot.slane %v852_v10, 2  ;;  %v854_v26 = vpop.f32.mrb[49].mxu1 }
 0x2a5   :  { %v3200_v23 = vadd.f32 %v1710_v29, %v3069_v57  ;;  %v1690_v59 = vmax.f32 %v1596_v63, 0.0  ;;  %v1602_v2 = vrot.slane %v1601_v44, 1  ;;  %v1612_v36 = vrot.slane %v1611_v35, 4  ;;  %v3202_v49 = vpop.f32.mrb[66].mxu0 }
 0x2a6   :  { %v1607_v8 = vrot.slane %v1606_v22, 2  ;;  %v1565_v3 = vadd.f32 %v1533_v0, %v3021_v4  ;;  %v1795_v48 = vadd.f32 %v1763_v39, %v854_v26  ;;  %v3206_v51 = vpop.f32.mrb[67].mxu0  ;;  %v1764_v43 = vrot.slane %v3139_v37, 1 }
 0x2a7   :  { %v1711_v42 = vmul.f32 %v3165_v31, %v1690_v59  ;;  %v1603_v20 = vmax.f32 %v1601_v44, %v1602_v2  ;;  %v1613_v57 = vmax.f32 %v1611_v35, %v1612_v36  ;;  %v858_v33 = vpop.f32.mrb[50].mxu1  ;;  %v1828_v37 = vrot.slane %v3142_v19, 2 }
 0x2a8   :  { %v1608_v45 = vmax.f32 %v1606_v22, %v1607_v8  ;;  %v1618_v11 = vsel %vm1575_vm3, %v1565_v3, -inf  ;;  %v3211_v29 = vadd.f32 %v1827_v34, %v1795_v48  ;;  %v1534_v63 = vrot.slane %v858_v33, 2  ;;  %v860_v16 = vpop.f32.mrb[51].mxu1 }
 0x2a9   :  { %v3214_v10 = vadd.f32 %v1711_v42, %v3082_v17  ;;  %v1691_v4 = vmax.f32 %v1603_v20, 0.0  ;;  %v1614_v39 = vrot.slane %v1613_v57, 2  ;;  %v1619_v0 = vrot.slane %v1618_v11, 4  ;;  %v3216_v26 = vpop.f32.mrb[68].mxu0 }
 0x2aa   :  { %v1609_v44 = vrot.slane %v1608_v45, 1  ;;  %v1566_v35 = vadd.f32 %v1534_v63, %v3024_v14  ;;  %v1796_v22 = vadd.f32 %v1764_v43, %v860_v16  ;;  %v3220_v59 = vpop.f32.mrb[69].mxu0  ;;  %v1765_v36 = vrot.slane %v3152_v9, 1 }
 0x2ab   :  { %3500 = vst [vmem:[#allocation9_spill] sm:$0xff] %v3214_v10  ;;  %v1712_v2 = vmul.f32 %v3165_v31, %v1691_v4  ;;  %v1615_v34 = vmax.f32 %v1613_v57, %v1614_v39  ;;  %v1620_v17 = vmax.f32 %v1618_v11, %v1619_v0  ;;  %v864_v8 = vpop.f32.mrb[52].mxu1  ;;  %v1829_v9 = vrot.slane %v3160_v27, 2 }
 0x2ac   :  { %v1610_v3 = vmax.f32 %v1608_v45, %v1609_v44  ;;  %v1625_v48 = vsel %vm1575_vm3, %v1566_v35, -inf  ;;  %v3225_v42 = vadd.f32 %v1828_v37, %v1796_v22  ;;  %v1535_v20 = vrot.slane %v864_v8, 2  ;;  %v866_v19 = vpop.f32.mrb[53].mxu1 }
 0x2ad   :  { %v3228_v33 = vadd.f32 %v1712_v2, %v3085_v24  ;;  %v1616_v14 = vrot.slane %v1615_v34, 1  ;;  %v1621_v43 = vrot.slane %v1620_v17, 2  ;;  %v1626_v63 = vrot.slane %v1625_v48, 4  ;;  %v3230_v16 = vpop.f32.mrb[70].mxu0 }
 0x2ae   :  { %v1692_v4 = vmax.f32 %v1610_v3, 0.0  ;;  %v1567_v57 = vadd.f32 %v1535_v20, %v3026_v25  ;;  %v1797_v45 = vadd.f32 %v1765_v36, %v866_v19  ;;  %v3234_v11 = vpop.f32.mrb[71].mxu0  ;;  %v1766_v39 = vrot.slane %v3172_v6, 1 }
 0x2af   :  { %v1617_v0 = vmax.f32 %v1615_v34, %v1616_v14  ;;  %v1622_v37 = vmax.f32 %v1620_v17, %v1621_v43  ;;  %v1627_v44 = vmax.f32 %v1625_v48, %v1626_v63  ;;  %v870_v24 = vpop.f32.mrb[54].mxu1  ;;  %v1830_v34 = vrot.slane %v3178_v56, 2 }
 0x2b0   :  { %v1713_v35 = vmul.f32 %v3165_v31, %v1692_v4  ;;  %v1632_v22 = vsel %vm1575_vm3, %v1567_v57, -inf  ;;  %v3239_v2 = vadd.f32 %v1829_v9, %v1797_v45  ;;  %v1536_v8 = vrot.slane %v870_v24, 2  ;;  %v872_v3 = vpop.f32.mrb[55].mxu1 }
 0x2b1   :  { %v1693_v27 = vmax.f32 %v1617_v0, 0.0  ;;  %v1623_v10 = vrot.slane %v1622_v37, 1  ;;  %v1628_v25 = vrot.slane %v1627_v44, 2  ;;  %v1633_v36 = vrot.slane %v1632_v22, 4  ;;  %v3241_v20 = vpop.f32.mrb[72].mxu0 }
 0x2b2   :  { %v3244_v6 = vadd.f32 %v1713_v35, %v3092_v32  ;;  %v1568_v17 = vadd.f32 %v1536_v8, %v3030_v40  ;;  %v1798_v48 = vadd.f32 %v1766_v39, %v872_v3  ;;  %v3248_v19 = vpop.f32.mrb[73].mxu0  ;;  %v1767_v57 = vrot.slane %v3188_v18, 1 }
 0x2b3   :  { %v1714_v14 = vmul.f32 %v3165_v31, %v1693_v27  ;;  %v1624_v43 = vmax.f32 %v1622_v37, %v1623_v10  ;;  %v1629_v63 = vmax.f32 %v1627_v44, %v1628_v25  ;;  %v1634_v4 = vmax.f32 %v1632_v22, %v1633_v36  ;;  %v876_v9 = vpop.f32.mrb[56].mxu1 }
 0x2b4   :  { %v1639_v45 = vsel %vm1575_vm3, %v1568_v17, -inf  ;;  %v3253_v0 = vadd.f32 %v1830_v34, %v1798_v48  ;;  %v1537_v32 = vrot.slane %v876_v9, 2  ;;  %v878_v24 = vpop.f32.mrb[57].mxu1  ;;  %v1831_v3 = vrot.slane %v3192_v41, 2 }
 0x2b5   :  { %v1694_v56 = vmax.f32 %v1624_v43, 0.0  ;;  %v1630_v35 = vrot.slane %v1629_v63, 1  ;;  %v1635_v40 = vrot.slane %v1634_v4, 2  ;;  %v1640_v39 = vrot.slane %v1639_v45, 4  ;;  %v3255_v8 = vpop.f32.mrb[74].mxu0 }
 0x2b6   :  { %v1569_v10 = vadd.f32 %v1537_v32, %v3036_v60  ;;  %v1799_v37 = vadd.f32 %v1767_v57, %v878_v24  ;;  %v3259_v44 = vpop.f32.mrb[75].mxu0  ;;  %v3262_v18 = vadd.f32 %v1714_v14, %v3097_v46  ;;  %v1768_v17 = vrot.slane %v3202_v49, 1 }
 0x2b7   :  { %v1715_v22 = vmul.f32 %v3165_v31, %v1694_v56  ;;  %v1631_v27 = vmax.f32 %v1629_v63, %v1630_v35  ;;  %v1636_v25 = vmax.f32 %v1634_v4, %v1635_v40  ;;  %v1641_v36 = vmax.f32 %v1639_v45, %v1640_v39  ;;  %v882_v34 = vpop.f32.mrb[58].mxu1 }
 0x2b8   :  { %v1646_v48 = vsel %vm1575_vm3, %v1569_v10, -inf  ;;  %v3267_v43 = vadd.f32 %v1831_v3, %v1799_v37  ;;  %v1538_v41 = vrot.slane %v882_v34, 2  ;;  %v884_v60 = vpop.f32.mrb[59].mxu1  ;;  %v1832_v46 = vrot.slane %v3206_v51, 2 }
 0x2b9   :  { %v1695_v9 = vmax.f32 %v1631_v27, 0.0  ;;  %v1637_v57 = vrot.slane %v1636_v25, 1  ;;  %v1642_v32 = vrot.slane %v1641_v36, 2  ;;  %v1647_v24 = vrot.slane %v1646_v48, 4 }
 0x2ba   :  { %v1570_v14 = vadd.f32 %v1538_v41, %v3039_v12  ;;  %v1800_v63 = vadd.f32 %v1768_v17, %v884_v60  ;;  %v3272_v4 = vadd.f32 %v1715_v22, %v3101_v61  ;;  %v1769_v39 = vrot.slane %v3216_v26, 1 }
 0x2bb   :  { %v1638_v45 = vmax.f32 %v1636_v25, %v1637_v57  ;;  %v1643_v49 = vmax.f32 %v1641_v36, %v1642_v32  ;;  %v1648_v56 = vmax.f32 %v1646_v48, %v1647_v24  ;;  %v888_v35 = vpop.f32.mrb[60].mxu1  ;;  %v1716_v40 = vmul.f32 %v3165_v31, %v1695_v9 }
 0x2bc   :  { %v1653_v3 = vsel %vm1575_vm3, %v1570_v14, -inf  ;;  %v3277_v10 = vadd.f32 %v1832_v46, %v1800_v63  ;;  %v1539_v37 = vrot.slane %v888_v35, 2  ;;  %v890_v51 = vpop.f32.mrb[61].mxu1  ;;  %v1833_v61 = vrot.slane %v3220_v59, 2 }
 0x2bd   :  { %v1696_v27 = vmax.f32 %v1638_v45, 0.0  ;;  %v1644_v12 = vrot.slane %v1643_v49, 1  ;;  %v1649_v34 = vrot.slane %v1648_v56, 2  ;;  %v1654_v17 = vrot.slane %v1653_v3, 4 }
 0x2be   :  { %v1571_v22 = vadd.f32 %v1539_v37, %v3044_v38  ;;  %v1801_v25 = vadd.f32 %v1769_v39, %v890_v51  ;;  %v3282_v36 = vadd.f32 %v1716_v40, %v3107_v30  ;;  %v1770_v57 = vrot.slane %v3230_v16, 1 }
 0x2bf   :  { %v1717_v26 = vmul.f32 %v3165_v31, %v1696_v27  ;;  %v1645_v48 = vmax.f32 %v1643_v49, %v1644_v12  ;;  %v1650_v41 = vmax.f32 %v1648_v56, %v1649_v34  ;;  %v1655_v60 = vmax.f32 %v1653_v3, %v1654_v17  ;;  %v894_v9 = vpop.f32.mrb[62].mxu1 }
 0x2c0   :  { %v1660_v32 = vsel %vm1575_vm3, %v1571_v22, -inf  ;;  %v3287_v24 = vadd.f32 %v1833_v61, %v1801_v25  ;;  %v1540_v46 = vrot.slane %v894_v9, 2  ;;  %v896_v59 = vpop.f32.mrb[63].mxu1  ;;  %v1834_v45 = vrot.slane %v3234_v11, 2 }
 0x2c1   :  { %v3290_v38 = vadd.f32 %v1717_v26, %v3113_v13  ;;  %v1697_v14 = vmax.f32 %v1645_v48, 0.0  ;;  %v1651_v30 = vrot.slane %v1650_v41, 1  ;;  %v1656_v63 = vrot.slane %v1655_v60, 2 }
 0x2c2   :  { %v1661_v49 = vrot.slane %v1660_v32, 4  ;;  %v1572_v56 = vadd.f32 %v1540_v46, %v3047_v1  ;;  %v1802_v35 = vadd.f32 %v1770_v57, %v896_v59  ;;  %v1771_v40 = vrot.slane %v3241_v20, 1 }
 0x2c3   :  { %v1718_v16 = vmul.f32 %v3165_v31, %v1697_v14  ;;  %v1652_v39 = vmax.f32 %v1650_v41, %v1651_v30  ;;  %v1657_v3 = vmax.f32 %v1655_v60, %v1656_v63  ;;  %v900_v37 = vpop.f32.mrb[64].mxu1  ;;  %v1835_v22 = vrot.slane %v3248_v19, 2 }
 0x2c4   :  { %v1662_v51 = vmax.f32 %v1660_v32, %v1661_v49  ;;  %v1667_v13 = vsel %vm1575_vm3, %v1572_v56, -inf  ;;  %v3297_v27 = vadd.f32 %v1834_v45, %v1802_v35  ;;  %v1541_v12 = vrot.slane %v900_v37, 2  ;;  %v902_v34 = vpop.f32.mrb[65].mxu1 }
 0x2c5   :  { %v3300_v11 = vadd.f32 %v1718_v16, %v3120_v21  ;;  %v1698_v17 = vmax.f32 %v1652_v39, 0.0  ;;  %v1658_v1 = vrot.slane %v1657_v3, 1  ;;  %v1668_v61 = vrot.slane %v1667_v13, 4 }
 0x2c6   :  { %v1663_v20 = vrot.slane %v1662_v51, 2  ;;  %v1573_v25 = vadd.f32 %v1541_v12, %v3074_v28  ;;  %v1803_v26 = vadd.f32 %v1771_v40, %v902_v34  ;;  %v1772_v41 = vrot.slane %v3255_v8, 1 }
 0x2c7   :  { %v1719_v48 = vmul.f32 %v3165_v31, %v1698_v17  ;;  %v1659_v60 = vmax.f32 %v1657_v3, %v1658_v1  ;;  %v1669_v9 = vmax.f32 %v1667_v13, %v1668_v61  ;;  %v906_v57 = vpop.f32.mrb[66].mxu1  ;;  %v1836_v45 = vrot.slane %v3259_v44, 2 }
 0x2c8   :  { %v1664_v32 = vmax.f32 %v1662_v51, %v1663_v20  ;;  %v1674_v21 = vsel %vm1575_vm3, %v1573_v25, -inf  ;;  %v3307_v46 = vadd.f32 %v1835_v22, %v1803_v26  ;;  %v1542_v59 = vrot.slane %v906_v57, 2  ;;  %v908_v14 = vpop.f32.mrb[67].mxu1  ;;  %v3502_v57 = vld [vmem:[#allocation5_spill] sm:$0xff] }
 0x2c9   :  { %v3310_v19 = vadd.f32 %v1719_v48, %v3129_v47  ;;  %v1699_v30 = vmax.f32 %v1659_v60, 0.0  ;;  %v1670_v28 = vrot.slane %v1669_v9, 2  ;;  %v1675_v63 = vrot.slane %v1674_v21, 4 }
 0x2ca   :  { %v1665_v49 = vrot.slane %v1664_v32, 1  ;;  %v1574_v8 = vadd.f32 %v1542_v59, %v3087_v53  ;;  %v1804_v56 = vadd.f32 %v1772_v41, %v908_v14  ;;  %v1409_v35 = vmax.f32 %v3175_v55, 0.0 }
 0x2cb   :  { %v1720_v16 = vmul.f32 %v3165_v31, %v1699_v30  ;;  %v1671_v40 = vmax.f32 %v1669_v9, %v1670_v28  ;;  %v1676_v39 = vmax.f32 %v1674_v21, %v1675_v63  ;;  %v2445_v3 = vpop.f32.mrb[68].mxu1  ;;  %v3501_v55 = vmax.f32 %v3157_v50, 0.0 }
 0x2cc   :  { %v1666_v37 = vmax.f32 %v1664_v32, %v1665_v49  ;;  %v1681_v47 = vsel %vm1575_vm3, %v1574_v8, -inf  ;;  %v3317_v51 = vadd.f32 %v1836_v45, %v1804_v56  ;;  %v1886_v13 = vrot.slane %v2445_v3, 3  ;;  %v1138_v12 = vpop.f32.mrb[69].mxu1  ;;  %v3503_v45 = vld [vmem:[#allocation8_spill] sm:$0xff] }
 0x2cd   :  { %v3320_v44 = vadd.f32 %v1720_v16, %v3135_v58  ;;  %v1672_v34 = vrot.slane %v1671_v40, 1  ;;  %v1677_v53 = vrot.slane %v1676_v39, 2  ;;  %v1682_v17 = vrot.slane %v1681_v47, 4 }
 0x2ce   :  { %v3325_v1 = vmul.f32 %v3057_v15, %v3501_v55  ;;  %v1700_v61 = vmax.f32 %v1666_v37, 0.0  ;;  %v1918_v22 = vadd.f32 %v1886_v13, %v3132_v62  ;;  %v1885_v20 = vrot.slane %v1138_v12, 3  ;;  %v3504_v37 = vld [vmem:[#allocation6_spill] sm:$0xff] }
 0x2cf   :  { %v1673_v25 = vmax.f32 %v1671_v40, %v1672_v34  ;;  %v1678_v26 = vmax.f32 %v1676_v39, %v1677_v53  ;;  %v1683_v48 = vmax.f32 %v1681_v47, %v1682_v17  ;;  %v2448_v41 = vpop.f32.mrb[70].mxu1  ;;  %v3329_v60 = vmul.f32 %v3057_v15, %v1409_v35 }
 0x2d0   :  { %v1721_v58 = vmul.f32 %v3165_v31, %v1700_v61  ;;  %v1941_v9 = vsel %vm1933_vm4, %v1918_v22, -inf  ;;  %v1917_v50 = vadd.f32 %v1885_v20, %v3502_v57  ;;  %v1888_v32 = vrot.slane %v2448_v41, 3  ;;  %v1148_v21 = vpop.f32.mrb[71].mxu1 }
 0x2d1   :  { %v1701_v59 = vmax.f32 %v1673_v25, 0.0  ;;  %v1679_v14 = vrot.slane %v1678_v26, 1  ;;  %v1684_v30 = vrot.slane %v1683_v48, 2  ;;  %v1942_v62 = vrot.slane %v1941_v9, 4 }
 0x2d2   :  { %v3335_v28 = vadd.f32 %v1721_v58, %v3148_v5  ;;  %v1934_v63 = vsel %vm1933_vm4, %v1917_v50, -inf  ;;  %v1920_v15 = vadd.f32 %v1888_v32, %v3503_v45  ;;  %v1887_v49 = vrot.slane %v1148_v21, 3 }
 0x2d3   :  { %v3340_v8 = vmul.f32 %v3165_v31, %v1701_v59  ;;  %v1680_v56 = vmax.f32 %v1678_v26, %v1679_v14  ;;  %v1685_v35 = vmax.f32 %v1683_v48, %v1684_v30  ;;  %v1943_v16 = vmax.f32 %v1941_v9, %v1942_v62  ;;  %v2451_v40 = vpop.f32.mrb[72].mxu1 }
 0x2d4   :  { %v1935_v39 = vrot.slane %v1934_v63, 4  ;;  %v1955_v3 = vsel %vm1933_vm4, %v1920_v15, -inf  ;;  %v1919_v47 = vadd.f32 %v1887_v49, %v3504_v37  ;;  %v1890_v13 = vrot.slane %v2451_v40, 3  ;;  %v1158_v5 = vpop.f32.mrb[73].mxu1 }
 0x2d5   :  { %v1702_v12 = vmax.f32 %v1680_v56, 0.0  ;;  %v1686_v34 = vrot.slane %v1685_v35, 1  ;;  %v1944_v53 = vrot.slane %v1943_v16, 2  ;;  %v1956_v17 = vrot.slane %v1955_v3, 4 }
 0x2d6   :  { %v1936_v55 = vmax.f32 %v1934_v63, %v1935_v39  ;;  %v1948_v61 = vsel %vm1933_vm4, %v1919_v47, -inf  ;;  %v1922_v22 = vadd.f32 %v1890_v13, %v3197_v52  ;;  %v1889_v20 = vrot.slane %v1158_v5, 3 }
 0x2d7   :  { %v3347_v25 = vmul.f32 %v3165_v31, %v1702_v12  ;;  %v3349_v26 = vmax.f32 %v1685_v35, %v1686_v34  ;;  %v1945_v48 = vmax.f32 %v1943_v16, %v1944_v53  ;;  %v1957_v41 = vmax.f32 %v1955_v3, %v1956_v17  ;;  %v2454_v58 = vpop.f32.mrb[74].mxu1 }
 0x2d8   :  { %v1937_v9 = vrot.slane %v1936_v55, 2  ;;  %v1949_v57 = vrot.slane %v1948_v61, 4  ;;  %v1969_v50 = vsel %vm1933_vm4, %v1922_v22, -inf  ;;  %v1921_v32 = vadd.f32 %v1889_v20, %v3183_v7  ;;  %v1168_v21 = vpop.f32.mrb[75].mxu1  ;;  %v3360_v7 = vld [vmem:[%s3494_s3 + $0x2] ss:$0 sm:$0xff] }
 0x2d9   :  { %v1703_v59 = vmax.f32 %v3349_v26, 0.0  ;;  %v1946_v14 = vrot.slane %v1945_v48, 1  ;;  %v1958_v52 = vrot.slane %v1957_v41, 2  ;;  %v1970_v30 = vrot.slane %v1969_v50, 4 }
 0x2da   :  { %v1938_v62 = vmax.f32 %v1936_v55, %v1937_v9  ;;  %v1950_v63 = vmax.f32 %v1948_v61, %v1949_v57  ;;  %v1962_v45 = vsel %vm1933_vm4, %v1921_v32, -inf  ;;  %v1892_v15 = vrot.slane %v2454_v58, 3 }
 0x2db   :  { %v1947_v49 = vmax.f32 %v1945_v48, %v1946_v14  ;;  %v1959_v56 = vmax.f32 %v1957_v41, %v1958_v52  ;;  %v1971_v35 = vmax.f32 %v1969_v50, %v1970_v30  ;;  %v1963_v16 = vrot.slane %v1962_v45, 4  ;;  %v3355_v40 = vpop.f32.mrb[76].mxu1  ;;  %v3369_v48 = vld [vmem:[%s3494_s3 + $0x3] ss:$0 sm:$0xff] }
 0x2dc   :  { %v1939_v39 = vrot.slane %v1938_v62, 1  ;;  %v1951_v3 = vrot.slane %v1950_v63, 2  ;;  %v1924_v37 = vadd.f32 %v1892_v15, %v3225_v42  ;;  %v1891_v47 = vrot.slane %v1168_v21, 3  ;;  %v1178_v13 = vpop.f32.mrb[77].mxu1 }
 0x2dd   :  { %v2047_v5 = vmax.f32 %v1947_v49, 0.0  ;;  %v1960_v12 = vrot.slane %v1959_v56, 1  ;;  %v1972_v34 = vrot.slane %v1971_v35, 2  ;;  %v1964_v53 = vmax.f32 %v1962_v45, %v1963_v16 }
 0x2de   :  { %v1940_v17 = vmax.f32 %v1938_v62, %v1939_v39  ;;  %v1952_v55 = vmax.f32 %v1950_v63, %v1951_v3  ;;  %v1983_v61 = vsel %vm1933_vm4, %v1924_v37, -inf  ;;  %v1923_v22 = vadd.f32 %v1891_v47, %v3211_v29 }
 0x2df   :  { %v2068_v20 = vmul.f32 %v3360_v7, %v2047_v5  ;;  %v1961_v42 = vmax.f32 %v1959_v56, %v1960_v12  ;;  %v1973_v41 = vmax.f32 %v1971_v35, %v1972_v34  ;;  %v1965_v58 = vrot.slane %v1964_v53, 2  ;;  %v2460_v9 = vpop.f32.mrb[78].mxu1 }
 0x2e0   :  { %v2046_v57 = vmax.f32 %v1940_v17, 0.0  ;;  %v1953_v50 = vrot.slane %v1952_v55, 1  ;;  %v1984_v32 = vrot.slane %v1983_v61, 4  ;;  %v1976_v21 = vsel %vm1933_vm4, %v1923_v22, -inf  ;;  %v1188_v14 = vpop.f32.mrb[79].mxu1 }
 0x2e1   :  { %v2084_v52 = vadd.f32 %v2068_v20, %v3200_v23  ;;  %v2049_v29 = vmax.f32 %v1961_v42, 0.0  ;;  %v1974_v30 = vrot.slane %v1973_v41, 1  ;;  %v1966_v62 = vmax.f32 %v1964_v53, %v1965_v58 }
 0x2e2   :  { %v2067_v63 = vmul.f32 %v3360_v7, %v2046_v57  ;;  %v1954_v45 = vmax.f32 %v1952_v55, %v1953_v50  ;;  %v1985_v15 = vmax.f32 %v1983_v61, %v1984_v32  ;;  %v1977_v49 = vrot.slane %v1976_v21, 4  ;;  %v3505_v32 = vld [vmem:[#allocation9_spill] sm:$0xff] }
 0x2e3   :  { %v3375_v56 = vadd.f32 %v3369_v48, %v2084_v52  ;;  %v2070_v35 = vmul.f32 %v3360_v7, %v2049_v29  ;;  %v1975_v16 = vmax.f32 %v1973_v41, %v1974_v30  ;;  %v1967_v39 = vrot.slane %v1966_v62, 1  ;;  %v2463_v3 = vpop.f32.mrb[80].mxu1 }
 0x2e4   :  { %v2083_v37 = vadd.f32 %v2067_v63, %v3186_v54  ;;  %v2048_v47 = vmax.f32 %v1954_v45, 0.0  ;;  %v1986_v23 = vrot.slane %v1985_v15, 2  ;;  %v1978_v5 = vmax.f32 %v1976_v21, %v1977_v49  ;;  %v1198_v12 = vpop.f32.mrb[81].mxu1 }
 0x2e5   :  { %v2136_v34 = vrot.slane %v3375_v56, 7  ;;  %v3381_v53 = vadd.f32 %v2070_v35, %v3228_v33  ;;  %v2051_v17 = vmax.f32 %v1975_v16, 0.0  ;;  %v1968_v55 = vmax.f32 %v1966_v62, %v1967_v39 }
 0x2e6   :  { %v3384_v61 = vadd.f32 %v3369_v48, %v2083_v37  ;;  %v2069_v22 = vmul.f32 %v3360_v7, %v2048_v47  ;;  %v1987_v20 = vmax.f32 %v1985_v15, %v1986_v23  ;;  %v1979_v42 = vrot.slane %v1978_v5, 2 }
 0x2e7   :  { %v3388_v54 = vmul.f32 %v3360_v7, %v2051_v17  ;;  %v2050_v41 = vmax.f32 %v1968_v55, 0.0  ;;  %v1894_v58 = vrot.slane %v3355_v40, 3  ;;  %v1893_v57 = vrot.slane %v1178_v13, 3  ;;  %v2466_v50 = vpop.f32.mrb[82].mxu1 }
 0x2e8   :  { %v2085_v33 = vadd.f32 %v2069_v22, %v3505_v32  ;;  %v1988_v21 = vrot.slane %v1987_v20, 1  ;;  %v1980_v52 = vmax.f32 %v1978_v5, %v1979_v42  ;;  %v1896_v29 = vrot.slane %v2460_v9, 3  ;;  %v1208_v30 = vpop.f32.mrb[83].mxu1 }
 0x2e9   :  { %v2071_v62 = vmul.f32 %v3360_v7, %v2050_v41  ;;  %v1926_v63 = vadd.f32 %v1894_v58, %v3253_v0  ;;  %v1925_v45 = vadd.f32 %v1893_v57, %v3239_v2  ;;  %v1895_v15 = vrot.slane %v1188_v14, 3 }
 0x2ea   :  { %v3396_v49 = vadd.f32 %v3369_v48, %v2085_v33  ;;  %v3398_v35 = vmax.f32 %v1987_v20, %v1988_v21  ;;  %v1981_v40 = vrot.slane %v1980_v52, 1  ;;  %v1928_v13 = vadd.f32 %v1896_v29, %v3277_v10 }
 0x2eb   :  { %v3402_v16 = vadd.f32 %v2071_v62, %v3244_v6  ;;  %v1997_v9 = vsel %vm1933_vm4, %v1926_v63, -inf  ;;  %v1990_v39 = vsel %vm1933_vm4, %v1925_v45, -inf  ;;  %v1927_v0 = vadd.f32 %v1895_v15, %v3267_v43 }
 0x2ec   :  { %v2053_v2 = vmax.f32 %v3398_v35, 0.0  ;;  %v3408_v14 = vmax.f32 %v1980_v52, %v1981_v40  ;;  %v1998_v37 = vrot.slane %v1997_v9, 4  ;;  %v1991_v47 = vrot.slane %v1990_v39, 4 }
 0x2ed   :  { %v2011_v23 = vsel %vm1933_vm4, %v1928_v13, -inf  ;;  %v2004_v5 = vsel %vm1933_vm4, %v1927_v0, -inf  ;;  %v1898_v10 = vrot.slane %v2463_v3, 3  ;;  %v1897_v17 = vrot.slane %v1198_v12, 3 }
 0x2ee   :  { %v2052_v6 = vmax.f32 %v3408_v14, 0.0  ;;  %v1999_v55 = vmax.f32 %v1997_v9, %v1998_v37  ;;  %v1992_v22 = vmax.f32 %v1990_v39, %v1991_v47  ;;  %v2012_v20 = vrot.slane %v2011_v23, 4 }
 0x2ef   :  { %v2005_v42 = vrot.slane %v2004_v5, 4  ;;  %v1930_v43 = vadd.f32 %v1898_v10, %v3297_v27  ;;  %v1929_v41 = vadd.f32 %v1897_v17, %v3287_v24  ;;  %v1900_v58 = vrot.slane %v2466_v50, 3 }
 0x2f0   :  { %v2000_v57 = vrot.slane %v1999_v55, 2  ;;  %v1993_v32 = vrot.slane %v1992_v22, 2  ;;  %v2013_v33 = vmax.f32 %v2011_v23, %v2012_v20  ;;  %v1899_v21 = vrot.slane %v1208_v30, 3 }
 0x2f1   :  { %v2006_v52 = vmax.f32 %v2004_v5, %v2005_v42  ;;  %v2025_v29 = vsel %vm1933_vm4, %v1930_v43, -inf  ;;  %v2018_v3 = vsel %vm1933_vm4, %v1929_v41, -inf  ;;  %v1932_v12 = vadd.f32 %v1900_v58, %v3317_v51 }
 0x2f2   :  { %v2001_v62 = vmax.f32 %v1999_v55, %v2000_v57  ;;  %v1994_v63 = vmax.f32 %v1992_v22, %v1993_v32  ;;  %v2014_v45 = vrot.slane %v2013_v33, 2  ;;  %v2026_v15 = vrot.slane %v2025_v29, 4 }
 0x2f3   :  { %v2007_v40 = vrot.slane %v2006_v52, 2  ;;  %v2019_v27 = vrot.slane %v2018_v3, 4  ;;  %v2039_v24 = vsel %vm1933_vm4, %v1932_v12, -inf  ;;  %v1931_v50 = vadd.f32 %v1899_v21, %v3307_v46 }
 0x2f4   :  { %v2002_v13 = vrot.slane %v2001_v62, 1  ;;  %v1995_v9 = vrot.slane %v1994_v63, 1  ;;  %v2015_v30 = vmax.f32 %v2013_v33, %v2014_v45  ;;  %v2027_v39 = vmax.f32 %v2025_v29, %v2026_v15 }
 0x2f5   :  { %v2008_v0 = vmax.f32 %v2006_v52, %v2007_v40  ;;  %v2020_v37 = vmax.f32 %v2018_v3, %v2019_v27  ;;  %v2040_v47 = vrot.slane %v2039_v24, 4  ;;  %v2032_v23 = vsel %vm1933_vm4, %v1931_v50, -inf }
 0x2f6   :  { %v2003_v51 = vmax.f32 %v2001_v62, %v2002_v13  ;;  %v1996_v5 = vmax.f32 %v1994_v63, %v1995_v9  ;;  %v2016_v10 = vrot.slane %v2015_v30, 1  ;;  %v2028_v17 = vrot.slane %v2027_v39, 2 }
 0x2f7   :  { %v2009_v55 = vrot.slane %v2008_v0, 1  ;;  %v2021_v22 = vrot.slane %v2020_v37, 2  ;;  %v2041_v20 = vmax.f32 %v2039_v24, %v2040_v47  ;;  %v2033_v42 = vrot.slane %v2032_v23, 4 }
 0x2f8   :  { %v2055_v43 = vmax.f32 %v2003_v51, 0.0  ;;  %v2054_v41 = vmax.f32 %v1996_v5, 0.0  ;;  %v2017_v46 = vmax.f32 %v2015_v30, %v2016_v10  ;;  %v2029_v58 = vmax.f32 %v2027_v39, %v2028_v17 }
 0x2f9   :  { %v2010_v57 = vmax.f32 %v2008_v0, %v2009_v55  ;;  %v2022_v32 = vmax.f32 %v2020_v37, %v2021_v22  ;;  %v2042_v33 = vrot.slane %v2041_v20, 2  ;;  %v2034_v21 = vmax.f32 %v2032_v23, %v2033_v42 }
 0x2fa   :  { %v2076_v52 = vmul.f32 %v3360_v7, %v2055_v43  ;;  %v2075_v29 = vmul.f32 %v3360_v7, %v2054_v41  ;;  %v2057_v3 = vmax.f32 %v2017_v46, 0.0  ;;  %v2030_v12 = vrot.slane %v2029_v58, 1 }
 0x2fb   :  { %v2056_v62 = vmax.f32 %v2010_v57, 0.0  ;;  %v2023_v63 = vrot.slane %v2022_v32, 1  ;;  %v2043_v45 = vmax.f32 %v2041_v20, %v2042_v33  ;;  %v2035_v15 = vrot.slane %v2034_v21, 2 }
 0x2fc   :  { %v2092_v40 = vadd.f32 %v2076_v52, %v3300_v11  ;;  %v2091_v27 = vadd.f32 %v2075_v29, %v3290_v38  ;;  %v2078_v24 = vmul.f32 %v3360_v7, %v2057_v3  ;;  %v2031_v50 = vmax.f32 %v2029_v58, %v2030_v12 }
 0x2fd   :  { %v2077_v13 = vmul.f32 %v3360_v7, %v2056_v62  ;;  %v2024_v9 = vmax.f32 %v2022_v32, %v2023_v63  ;;  %v2044_v30 = vrot.slane %v2043_v45, 1  ;;  %v2036_v39 = vmax.f32 %v2034_v21, %v2035_v15  ;;  %v3506_v21 = vld [vmem:[#allocation7_spill] sm:$0xff] }
 0x2fe   :  { %v2113_v0 = vadd.f32 %v3369_v48, %v2092_v40  ;;  %v2112_v37 = vadd.f32 %v3369_v48, %v2091_v27  ;;  %v2094_v47 = vadd.f32 %v2078_v24, %v3320_v44  ;;  %v2059_v23 = vmax.f32 %v2031_v50, 0.0 }
 0x2ff   :  { %v2093_v38 = vadd.f32 %v2077_v13, %v3310_v19  ;;  %v2058_v11 = vmax.f32 %v2024_v9, 0.0  ;;  %v2045_v51 = vmax.f32 %v2043_v45, %v2044_v30  ;;  %v2037_v5 = vrot.slane %v2036_v39, 1 }
 0x300   :  { %v2157_v10 = vrot.slane %v2113_v0, 7  ;;  %v2080_v17 = vmul.f32 %v3360_v7, %v2059_v23  ;;  %v2073_v55 = vmul.f32 %v3360_v7, %v2052_v6  ;;  %v2074_v22 = vmul.f32 %v3360_v7, %v2053_v2 }
 0x301   :  { %v2114_v44 = vadd.f32 %v3369_v48, %v2093_v38  ;;  %v2079_v19 = vmul.f32 %v3360_v7, %v2058_v11  ;;  %v2061_v20 = vmax.f32 %v2045_v51, 0.0  ;;  %v2038_v42 = vmax.f32 %v2036_v39, %v2037_v5 }
 0x302   :  { %v2088_v43 = vadd.f32 %v3388_v54, %v3262_v18  ;;  %v2089_v41 = vadd.f32 %v2073_v55, %v3272_v4  ;;  %v2090_v14 = vadd.f32 %v2074_v22, %v3282_v36  ;;  %v2107_v6 = vadd.f32 %v3369_v48, %v3381_v53 }
 0x303   :  { %v2095_v35 = vadd.f32 %v2079_v19, %v3335_v28  ;;  %v2060_v2 = vmax.f32 %v2038_v42, 0.0  ;;  %v2108_v46 = vadd.f32 %v3369_v48, %v3402_v16  ;;  %v2138_v58 = vsel %vm2137_vm5, %v2136_v34, %v3384_v61 }
 0x304   :  { %v2109_v18 = vadd.f32 %v3369_v48, %v2088_v43  ;;  %v2110_v4 = vadd.f32 %v3369_v48, %v2089_v41  ;;  %v2111_v36 = vadd.f32 %v3369_v48, %v2090_v14  ;;  %v2139_v54 = vrot.slane %v3396_v49, 6 }
 0x305   :  { %v2081_v53 = vmul.f32 %v3360_v7, %v2060_v2  ;;  %v2142_v28 = vrot.slane %v2107_v6, 5  ;;  %v2145_v57 = vrot.slane %v2108_v46, 4  ;;  %v1724_v16 = vmul.f32 %v3165_v31, %v1703_v59 }
 0x306   :  { %v2141_v56 = vsel %vm2140_vm6, %v2139_v54, %v2138_v58  ;;  %v2148_v32 = vrot.slane %v2109_v18, 3  ;;  %v2151_v34 = vrot.slane %v2110_v4, 2  ;;  %v2154_v61 = vrot.slane %v2111_v36, 1 }
 0x307   :  { %v2144_v33 = vsel %vm2143_vm7, %v2142_v28, %v2141_v56  ;;  %v1738_v52 = vadd.f32 %v3340_v8, %v3506_v21  ;;  %v1739_v49 = vadd.f32 %v3347_v25, %v3325_v1  ;;  %v1740_v29 = vadd.f32 %v1724_v16, %v3329_v60 }
 0x308   :  { %v2147_v3 = vsel %vm2146_vm8, %v2145_v57, %v2144_v33  ;;  %v2082_v26 = vmul.f32 %v3360_v7, %v2061_v20  ;;  %v2115_v31 = vadd.f32 %v3369_v48, %v2094_v47  ;;  %v2116_v59 = vadd.f32 %v3369_v48, %v2095_v35 }
 0x309   :  { %v2150_v12 = vsel %vm2149_vm9, %v2148_v32, %v2147_v3  ;;  %v2096_v62 = vadd.f32 %v2080_v17, %v1738_v52  ;;  %v2097_v63 = vadd.f32 %v2081_v53, %v1739_v49  ;;  %v2158_v45 = vsel %vm2137_vm5, %v2157_v10, %v2112_v37 }
 0x30a   :  { %v2153_v8 = vsel %vm2152_vm10, %v2151_v34, %v2150_v12  ;;  %v2098_v15 = vadd.f32 %v2082_v26, %v1740_v29  ;;  %v2159_v1 = vrot.slane %v2114_v44, 6  ;;  %v2161_v25 = vrot.slane %v2115_v31, 5 }
 0x30b   :  { %v2156_v60 = vsel %vm2155_vm11, %v2154_v61, %v2153_v8  ;;  %v2117_v40 = vadd.f32 %v3369_v48, %v2096_v62  ;;  %v2118_v7 = vadd.f32 %v3369_v48, %v2097_v63  ;;  %v2163_v27 = vrot.slane %v2116_v59, 4 }
 0x30c   :  { %2173 = vadd.xlane.f32.xlu0 %v2156_v60  ;;  %v2119_v24 = vadd.f32 %v3369_v48, %v2098_v15  ;;  %v2160_v50 = vsel %vm2140_vm6, %v2159_v1, %v2158_v45 }
 0x30d   :  { %v2162_v13 = vsel %vm2143_vm7, %v2161_v25, %v2160_v50  ;;  %v2165_v9 = vrot.slane %v2117_v40, 3  ;;  %v2167_v30 = vrot.slane %v2118_v7, 2 }
 0x30e   :  { %v2164_v39 = vsel %vm2146_vm8, %v2163_v27, %v2162_v13  ;;  %v2169_v37 = vrot.slane %v2119_v24, 1 }
 0x30f   :  { %v2166_v0 = vsel %vm2149_vm9, %v2165_v9, %v2164_v39 }
 0x310   :  { %v2168_v47 = vsel %vm2152_vm10, %v2167_v30, %v2166_v0 }
 0x311   :  { %v2170_v23 = vsel %vm2155_vm11, %v2169_v37, %v2168_v47 }
 0x312   :  { %2175 = vadd.xlane.f32.xlu1 %v2170_v23 }
 0x399   :  { %v2174_v38 = vpop.xlane.xlu0 %2173 }
 0x39a   :  { %v2322_v11 = vmul.f32 -1.442695, %v2174_v38 }
 0x39c   :  { %2553 = vpow2.f32 %v2322_v11 }
 0x39f   :  { %v2176_v48 = vpop.xlane.xlu1 %2175 }
 0x3a0   :  { %v2323_v51 = vmul.f32 -1.442695, %v2176_v48 }
 0x3a2   :  { %2555 = vpow2.f32 %v2323_v51 }
 0x3a6   :  { %v2554_v5 = vpop.eup %2553 }
 0x3a7   :  { %v2183_v10 = vadd.f32 1.0, %v2554_v5 }
 0x3a9   :  { %2557 = vrcp.f32 %v2183_v10 }
 0x3ac   :  { %v2556_v17 = vpop.eup %2555 }
 0x3ad   :  { %v2184_v55 = vadd.f32 1.0, %v2556_v17 }
 0x3af   :  { %2559 = vrcp.f32 %v2184_v55 }
 0x3b3   :  { %v2558_v22 = vpop.eup %2557 }
 0x3b4   :  { %2190 = vst.msk [vmem:[%s3495_s4] sm:$0xff] %vm2189_vm12, %v2558_v22 }
 0x3b9   :  { %v2560_v44 = vpop.eup %2559 }
 0x3ba   :  { %2191 = vst.msk [vmem:[%s3495_s4 + $0x8] sm:$0xff] %vm2189_vm12, %v2560_v44 }
 0x3bb   :  { %2196 = vsyncpa [#allocation3], 1 }

</bundles_post_ra>
